<compile_context>
chip_gen: v5e
topology: v5e:2x2
jax: 0.10.0
libtpu: 0.0.40
codegen_flags: <defaults>
</compile_context>

<pallas_src>
import functools

import jax
import jax.numpy as jnp
from jax.experimental import pallas as pl
from jax.experimental.pallas import tpu as pltpu


def _round_up(x: int, m: int) -> int:
    return ((x + m - 1) // m) * m


def _num_tensorcores() -> int:
    """Best-effort TensorCores-per-chip: v7x has 2, v5e/v6e have 1."""
    try:
        kind = str(getattr(jax.devices()[0], "device_kind", "")).lower()
    except Exception:
        return 1
    if "v7" in kind:
        return 2
    return 1


def _choose_tiles(batch: int, cap: int, num_tc: int):
    """Pick (batch_tile, padded_batch) with as few grid steps as possible.

    Single-TC chips: one tile = whole batch (grid=(1,), no padding needed
    since a full-extent block is exempt from the (8,128) rule).
    v7x: split into exactly num_tc tiles (8-aligned, no padding) so
    dimension_semantics=("parallel",) shards one tile per TensorCore.
    """
    if num_tc >= 2 and batch % (8 * num_tc) == 0 and batch // num_tc <= cap:
        return batch // num_tc, batch
    if batch <= cap:
        return batch, batch
    tb = _round_up(cap, 8)
    return tb, _round_up(batch, tb)


# -----------------------------------------------------------------------------
# Kernel: one batch tile of the whole forward pass (4 MXU matmuls, fused heads)
# -----------------------------------------------------------------------------
def poker_net_kernel(
    x_ref,            # (TB, input_dim)      f32  (cast to bf16 in-kernel)
    w1_ref, b1_ref,   # (input_dim, H) bf16, (1, H)       f32
    w2_ref, b2_ref,   # (H, H)        bf16,  (1, H)       f32
    wh_ref, bh_ref,   # (H, 2H)       bf16,  (1, 2H)      f32   [wp1 | wv1]
    wo_ref, bo_ref,   # (2H, OUT_PAD) bf16,  (1, OUT_PAD) f32   block-diag [wp2; wv2]
    out_ref,          # (TB, OUT_PAD) bf16  lane-dense output slab
):
    x = x_ref[...].astype(jnp.bfloat16)

    # shared trunk: Linear -> ReLU -> Linear -> ReLU (f32 accumulate, f32 VPU)
    h = jnp.dot(x, w1_ref[...], preferred_element_type=jnp.float32) + b1_ref[...]
    h = jnp.maximum(h, 0.0)
    h = jnp.dot(h.astype(jnp.bfloat16), w2_ref[...],
                preferred_element_type=jnp.float32) + b2_ref[...]
    h = jnp.maximum(h, 0.0)

    # fused policy+value hidden layer: one (TB,H) @ (H,2H) matmul
    hh = jnp.dot(h.astype(jnp.bfloat16), wh_ref[...],
                 preferred_element_type=jnp.float32) + bh_ref[...]
    hh = jnp.maximum(hh, 0.0)

    # fused block-diagonal output layer -> lane-dense (TB, OUT_PAD) slab
    y = jnp.dot(hh.astype(jnp.bfloat16), wo_ref[...],
                preferred_element_type=jnp.float32) + bo_ref[...]
    out_ref[...] = y.astype(out_ref.dtype)


# -----------------------------------------------------------------------------
# Parameter packing: fuse heads, cast matmul weights to bf16 (biases stay f32)
# -----------------------------------------------------------------------------
def pack_params(p, action_dim):
    hidden = p["w2"].shape[0]
    out_pad = _round_up(action_dim + 1, 128)      # lane-dense output width

    # fused head hidden layer: [wp1 | wv1] -> (H, 2H)
    wh = jnp.concatenate([p["wp1"], p["wv1"]], axis=1)
    bh = jnp.concatenate([p["bp1"], p["bv1"]], axis=1)

    # fused, block-diagonal output layer: (2H, OUT_PAD)
    #   rows 0:H  (policy hidden) -> cols [0:action_dim]      <- wp2
    #   rows H:2H (value hidden)  -> col  [action_dim]        <- wv2
    wo = jnp.zeros((2 * hidden, out_pad), jnp.float32)
    wo = wo.at[:hidden, :action_dim].set(p["wp2"])
    wo = wo.at[hidden:, action_dim:action_dim + 1].set(p["wv2"])
    bo = jnp.zeros((1, out_pad), jnp.float32)
    bo = bo.at[:, :action_dim].set(p["bp2"])
    bo = bo.at[:, action_dim:action_dim + 1].set(p["bv2"])

    bf = jnp.bfloat16
    return dict(
        w1=p["w1"].astype(bf), b1=p["b1"],
        w2=p["w2"].astype(bf), b2=p["b2"],
        wh=wh.astype(bf),      bh=bh,
        wo=wo.astype(bf),      bo=bo,
    )


def _resident_spec(shape):
    """Full-array block, constant index_map -> stays in VMEM across the grid.

    Since the block index never changes, a single buffer suffices
    (pl.Buffered(1)) — saves ~half the weight VMEM vs default double-buffering.
    """
    try:
        return pl.BlockSpec(shape, lambda i: (0, 0), pipeline_mode=pl.Buffered(1))
    except Exception:
        return pl.BlockSpec(shape, lambda i: (0, 0))


# -----------------------------------------------------------------------------
# Forward wrapper: one (or two, on v7x) big batch tiles, weights VMEM-resident
# -----------------------------------------------------------------------------
@functools.partial(jax.jit, static_argnames=("action_dim", "tile_cap", "return_slab"))
def poker_network_forward(x, fused, *, action_dim, tile_cap=2048, return_slab=False):
    batch, input_dim = x.shape
    hidden = fused["w2"].shape[1]
    out_pad = fused["wo"].shape[1]

    num_tc = _num_tensorcores()
    tb, padded = _choose_tiles(batch, tile_cap, num_tc)

    xb = x  # f32 straight into the kernel; cast happens in-kernel (no wrapper op)
    if padded != batch:  # only for very large batches that don't divide the cap
        xb = jnp.pad(xb, ((0, padded - batch), (0, 0)))

    grid = (padded // tb,)

    in_specs = [
        pl.BlockSpec((tb, input_dim), lambda i: (i, 0)),   # x: tiled over batch
        _resident_spec(fused["w1"].shape), _resident_spec(fused["b1"].shape),
        _resident_spec(fused["w2"].shape), _resident_spec(fused["b2"].shape),
        _resident_spec(fused["wh"].shape), _resident_spec(fused["bh"].shape),
        _resident_spec(fused["wo"].shape), _resident_spec(fused["bo"].shape),
    ]
    out_specs = pl.BlockSpec((tb, out_pad), lambda i: (i, 0))

    weight_bytes = sum(int(v.size) * v.dtype.itemsize for v in fused.values())
    flops = 2 * padded * (input_dim * hidden + hidden * hidden
                          + hidden * 2 * hidden + 2 * hidden * out_pad)
    bytes_accessed = int(xb.size) * 4 + weight_bytes + padded * out_pad * 2

    # VMEM budget: double-buffered x + output tiles, single-buffered weights,
    # plus headroom for f32/bf16 intermediates. Set explicitly so v5e's 16 MiB
    # scoped default never binds when tiles are enlarged.
    vmem_needed = (2 * tb * input_dim * 4 + 2 * tb * out_pad * 2
                   + weight_bytes + 8 * tb * hidden * 4)
    vmem_limit = int(min(max(2 * vmem_needed, 32 * 1024 * 1024), 56 * 1024 * 1024))

    slab = pl.pallas_call(
        poker_net_kernel,
        out_shape=jax.ShapeDtypeStruct((padded, out_pad), jnp.bfloat16),
        grid=grid,
        in_specs=in_specs,
        out_specs=out_specs,
        compiler_params=pltpu.CompilerParams(
            dimension_semantics=("parallel",),
            vmem_limit_bytes=vmem_limit),
        cost_estimate=pl.CostEstimate(
            flops=flops, transcendentals=0, bytes_accessed=bytes_accessed),
    )(xb, fused["w1"], fused["b1"], fused["w2"], fused["b2"],
      fused["wh"], fused["bh"], fused["wo"], fused["bo"])

    if return_slab:
        # Overhead-free path: consumer slices logits/value out of the padded
        # slab lazily (cols [0:A] = logits, col A = value, rows [0:batch]).
        return slab

    action_logits = slab[:batch, :action_dim].astype(jnp.float32)
    state_values = slab[:batch, action_dim:action_dim + 1].astype(jnp.float32)
    return action_logits, state_values


# -----------------------------------------------------------------------------
# Init + references
# -----------------------------------------------------------------------------
def init_params(key, input_dim, action_dim, hidden_dim):
    """Deterministic synthetic init (nn.Linear-style bounds). (in, out) layout."""
    keys = jax.random.split(key, 12)

    def lin(kw, kb, fan_in, fan_out):
        bound = 1.0 / jnp.sqrt(fan_in)
        w = jax.random.uniform(kw, (fan_in, fan_out), jnp.float32, -bound, bound)
        b = jax.random.uniform(kb, (1, fan_out), jnp.float32, -bound, bound)
        return w, b

    w1, b1 = lin(keys[0], keys[1], input_dim, hidden_dim)
    w2, b2 = lin(keys[2], keys[3], hidden_dim, hidden_dim)
    wp1, bp1 = lin(keys[4], keys[5], hidden_dim, hidden_dim)
    wp2, bp2 = lin(keys[6], keys[7], hidden_dim, action_dim)
    wv1, bv1 = lin(keys[8], keys[9], hidden_dim, hidden_dim)
    wv2, bv2 = lin(keys[10], keys[11], hidden_dim, 1)
    return dict(w1=w1, b1=b1, w2=w2, b2=b2,
                wp1=wp1, bp1=bp1, wp2=wp2, bp2=bp2,
                wv1=wv1, bv1=bv1, wv2=wv2, bv2=bv2)


def reference_forward_f32(x, p):
    """Pure-f32 JAX reference matching the PyTorch forward exactly."""
    h = jnp.maximum(x @ p["w1"] + p["b1"], 0.0)
    h = jnp.maximum(h @ p["w2"] + p["b2"], 0.0)
    pol = jnp.maximum(h @ p["wp1"] + p["bp1"], 0.0)
    logits = pol @ p["wp2"] + p["bp2"]
    val = jnp.maximum(h @ p["wv1"] + p["bv1"], 0.0)
    values = val @ p["wv2"] + p["bv2"]
    return logits, values


def reference_forward_bf16(x, p):
    """Reference mirroring the kernel's bf16-matmul / f32-accumulate numerics."""
    bf = jnp.bfloat16

    def mm(a, w):
        return jnp.dot(a.astype(bf), w.astype(bf), preferred_element_type=jnp.float32)

    h = jnp.maximum(mm(x, p["w1"]) + p["b1"], 0.0)
    h = jnp.maximum(mm(h, p["w2"]) + p["b2"], 0.0)
    pol = jnp.maximum(mm(h, p["wp1"]) + p["bp1"], 0.0)
    logits = mm(pol, p["wp2"]) + p["bp2"]
    val = jnp.maximum(mm(h, p["wv1"]) + p["bv1"], 0.0)
    values = mm(val, p["wv2"]) + p["bv2"]
    return logits, values


if __name__ == "__main__":
    # Small shapes consistent with the module (poker state vector -> MLP heads),
    # with enough batch rows to exercise the tiling (1 tile on v5e/v6e, 2 on v7x).
    batch, input_dim, action_dim, hidden_dim = 512, 32, 8, 128

    key = jax.random.PRNGKey(0)
    k_x, k_p = jax.random.split(key)
    x = jax.random.normal(k_x, (batch, input_dim), jnp.float32)
    params = init_params(k_p, input_dim, action_dim, hidden_dim)
    fused = pack_params(params, action_dim)

    logits, values = poker_network_forward(x, fused, action_dim=action_dim)
    jax.block_until_ready((logits, values))

    assert logits.shape == (batch, action_dim)
    assert values.shape == (batch, 1)

    # Tight check vs. a reference with identical bf16-matmul / f32-accum numerics
    # (tolerance widened slightly for the bf16 output store).
    ref_l_bf, ref_v_bf = reference_forward_bf16(x, params)
    assert jnp.allclose(logits, ref_l_bf, atol=1e-2, rtol=2e-2)
    assert jnp.allclose(values, ref_v_bf, atol=1e-2, rtol=2e-2)

    # Loose check vs. the pure-f32 PyTorch-equivalent forward (bf16 weight error).
    ref_l_f32, ref_v_f32 = reference_forward_f32(x, params)
    assert jnp.allclose(logits, ref_l_f32, atol=6e-2, rtol=6e-2)
    assert jnp.allclose(values, ref_v_f32, atol=6e-2, rtol=6e-2)

    # TODO(synk): get_action's legal-action masking / Categorical sampling is
    # host-side RL glue (not part of the nn forward) and is left out.
    print("KERNEL_OK")
</pallas_src>

<mosaic_0001>
module attributes {stable_mosaic.version = 11 : i64} {
  func.func @poker_net_kernel(%arg0: i32, %arg1: memref<512x32xf32, #tpu.memory_space<vmem>>, %arg2: memref<32x128xbf16, #tpu.memory_space<vmem>>, %arg3: memref<1x128xf32, #tpu.memory_space<vmem>>, %arg4: memref<128x128xbf16, #tpu.memory_space<vmem>>, %arg5: memref<1x128xf32, #tpu.memory_space<vmem>>, %arg6: memref<128x256xbf16, #tpu.memory_space<vmem>>, %arg7: memref<1x256xf32, #tpu.memory_space<vmem>>, %arg8: memref<256x128xbf16, #tpu.memory_space<vmem>>, %arg9: memref<1x128xf32, #tpu.memory_space<vmem>>, %arg10: memref<512x128xbf16, #tpu.memory_space<vmem>>) attributes {dimension_semantics = [#tpu.dimension_semantics<parallel>], iteration_bounds = array<i64: 1>, scalar_prefetch = 0 : i64, scratch_operands = 0 : i64, tpu.core_type = #tpu.core_type<tc>, window_params = [{transform_indices = @transform_0, window_bounds = array<i64: 512, 32>}, {pipeline_mode = #tpu.pipeline_mode<synchronous>, transform_indices = @transform_1, window_bounds = array<i64: 32, 128>}, {pipeline_mode = #tpu.pipeline_mode<synchronous>, transform_indices = @transform_2, window_bounds = array<i64: 1, 128>}, {pipeline_mode = #tpu.pipeline_mode<synchronous>, transform_indices = @transform_3, window_bounds = array<i64: 128, 128>}, {pipeline_mode = #tpu.pipeline_mode<synchronous>, transform_indices = @transform_4, window_bounds = array<i64: 1, 128>}, {pipeline_mode = #tpu.pipeline_mode<synchronous>, transform_indices = @transform_5, window_bounds = array<i64: 128, 256>}, {pipeline_mode = #tpu.pipeline_mode<synchronous>, transform_indices = @transform_6, window_bounds = array<i64: 1, 256>}, {pipeline_mode = #tpu.pipeline_mode<synchronous>, transform_indices = @transform_7, window_bounds = array<i64: 256, 128>}, {pipeline_mode = #tpu.pipeline_mode<synchronous>, transform_indices = @transform_8, window_bounds = array<i64: 1, 128>}, {transform_indices = @transform_9, window_bounds = array<i64: 512, 128>}]} {
    %c0 = arith.constant 0 : index
    %c0_0 = arith.constant 0 : index
    %0 = vector.load %arg1[%c0, %c0_0] : memref<512x32xf32, #tpu.memory_space<vmem>>, vector<512x32xf32>
    %1 = arith.truncf %0 : vector<512x32xf32> to vector<512x32xbf16>
    %c0_1 = arith.constant 0 : index
    %c0_2 = arith.constant 0 : index
    %2 = vector.load %arg2[%c0_1, %c0_2] : memref<32x128xbf16, #tpu.memory_space<vmem>>, vector<32x128xbf16>
    %cst = arith.constant dense<0.000000e+00> : vector<512x128xf32>
    %3 = tpu.matmul %1, %2, %cst {dimension_numbers = #tpu.dot_dimension_numbers<[1], [0], [0], [1], [0, 0, 1, 1], [], []>} : vector<512x32xbf16>, vector<32x128xbf16>, vector<512x128xf32> -> vector<512x128xf32>
    %c0_3 = arith.constant 0 : index
    %c0_4 = arith.constant 0 : index
    %4 = vector.load %arg3[%c0_3, %c0_4] : memref<1x128xf32, #tpu.memory_space<vmem>>, vector<1x128xf32>
    %5 = vector.broadcast %4 : vector<1x128xf32> to vector<512x128xf32>
    %6 = arith.addf %3, %5 : vector<512x128xf32>
    %cst_5 = arith.constant 0.000000e+00 : f32
    %7 = vector.broadcast %cst_5 : f32 to vector<512x128xf32>
    %8 = arith.maximumf %6, %7 : vector<512x128xf32>
    %9 = arith.truncf %8 : vector<512x128xf32> to vector<512x128xbf16>
    %c0_6 = arith.constant 0 : index
    %c0_7 = arith.constant 0 : index
    %10 = vector.load %arg4[%c0_6, %c0_7] : memref<128x128xbf16, #tpu.memory_space<vmem>>, vector<128x128xbf16>
    %cst_8 = arith.constant dense<0.000000e+00> : vector<512x128xf32>
    %11 = tpu.matmul %9, %10, %cst_8 {dimension_numbers = #tpu.dot_dimension_numbers<[1], [0], [0], [1], [0, 0, 1, 1], [], []>} : vector<512x128xbf16>, vector<128x128xbf16>, vector<512x128xf32> -> vector<512x128xf32>
    %c0_9 = arith.constant 0 : index
    %c0_10 = arith.constant 0 : index
    %12 = vector.load %arg5[%c0_9, %c0_10] : memref<1x128xf32, #tpu.memory_space<vmem>>, vector<1x128xf32>
    %13 = vector.broadcast %12 : vector<1x128xf32> to vector<512x128xf32>
    %14 = arith.addf %11, %13 : vector<512x128xf32>
    %cst_11 = arith.constant 0.000000e+00 : f32
    %15 = vector.broadcast %cst_11 : f32 to vector<512x128xf32>
    %16 = arith.maximumf %14, %15 : vector<512x128xf32>
    %17 = arith.truncf %16 : vector<512x128xf32> to vector<512x128xbf16>
    %c0_12 = arith.constant 0 : index
    %c0_13 = arith.constant 0 : index
    %18 = vector.load %arg6[%c0_12, %c0_13] : memref<128x256xbf16, #tpu.memory_space<vmem>>, vector<128x256xbf16>
    %cst_14 = arith.constant dense<0.000000e+00> : vector<512x256xf32>
    %19 = tpu.matmul %17, %18, %cst_14 {dimension_numbers = #tpu.dot_dimension_numbers<[1], [0], [0], [1], [0, 0, 1, 1], [], []>} : vector<512x128xbf16>, vector<128x256xbf16>, vector<512x256xf32> -> vector<512x256xf32>
    %c0_15 = arith.constant 0 : index
    %c0_16 = arith.constant 0 : index
    %20 = vector.load %arg7[%c0_15, %c0_16] : memref<1x256xf32, #tpu.memory_space<vmem>>, vector<1x256xf32>
    %21 = vector.broadcast %20 : vector<1x256xf32> to vector<512x256xf32>
    %22 = arith.addf %19, %21 : vector<512x256xf32>
    %cst_17 = arith.constant 0.000000e+00 : f32
    %23 = vector.broadcast %cst_17 : f32 to vector<512x256xf32>
    %24 = arith.maximumf %22, %23 : vector<512x256xf32>
    %25 = arith.truncf %24 : vector<512x256xf32> to vector<512x256xbf16>
    %c0_18 = arith.constant 0 : index
    %c0_19 = arith.constant 0 : index
    %26 = vector.load %arg8[%c0_18, %c0_19] : memref<256x128xbf16, #tpu.memory_space<vmem>>, vector<256x128xbf16>
    %cst_20 = arith.constant dense<0.000000e+00> : vector<512x128xf32>
    %27 = tpu.matmul %25, %26, %cst_20 {dimension_numbers = #tpu.dot_dimension_numbers<[1], [0], [0], [1], [0, 0, 1, 1], [], []>} : vector<512x256xbf16>, vector<256x128xbf16>, vector<512x128xf32> -> vector<512x128xf32>
    %c0_21 = arith.constant 0 : index
    %c0_22 = arith.constant 0 : index
    %28 = vector.load %arg9[%c0_21, %c0_22] : memref<1x128xf32, #tpu.memory_space<vmem>>, vector<1x128xf32>
    %29 = vector.broadcast %28 : vector<1x128xf32> to vector<512x128xf32>
    %30 = arith.addf %27, %29 : vector<512x128xf32>
    %31 = arith.truncf %30 : vector<512x128xf32> to vector<512x128xbf16>
    %c0_23 = arith.constant 0 : index
    %c0_24 = arith.constant 0 : index
    %32 = vector.load %arg10[%c0_23, %c0_24] : memref<512x128xbf16, #tpu.memory_space<vmem>>, vector<512x128xbf16>
    tpu.vector_store %arg10[%c0_23, %c0_24], %31 {strides = array<i32>} : memref<512x128xbf16, #tpu.memory_space<vmem>>, vector<512x128xbf16>,
    return
  }
  func.func @transform_0(%arg0: i32) -> (i32, i32) {
    %c0_i32 = arith.constant 0 : i32
    %c0_i32_0 = arith.constant 0 : i32
    return %arg0, %c0_i32 : i32, i32
  }
  func.func @transform_1(%arg0: i32) -> (i32, i32) {
    %c0_i32 = arith.constant 0 : i32
    %c0_i32_0 = arith.constant 0 : i32
    %c0_i32_1 = arith.constant 0 : i32
    return %c0_i32, %c0_i32_0 : i32, i32
  }
  func.func @transform_2(%arg0: i32) -> (i32, i32) {
    %c0_i32 = arith.constant 0 : i32
    %c0_i32_0 = arith.constant 0 : i32
    %c0_i32_1 = arith.constant 0 : i32
    return %c0_i32, %c0_i32_0 : i32, i32
  }
  func.func @transform_3(%arg0: i32) -> (i32, i32) {
    %c0_i32 = arith.constant 0 : i32
    %c0_i32_0 = arith.constant 0 : i32
    %c0_i32_1 = arith.constant 0 : i32
    return %c0_i32, %c0_i32_0 : i32, i32
  }
  func.func @transform_4(%arg0: i32) -> (i32, i32) {
    %c0_i32 = arith.constant 0 : i32
    %c0_i32_0 = arith.constant 0 : i32
    %c0_i32_1 = arith.constant 0 : i32
    return %c0_i32, %c0_i32_0 : i32, i32
  }
  func.func @transform_5(%arg0: i32) -> (i32, i32) {
    %c0_i32 = arith.constant 0 : i32
    %c0_i32_0 = arith.constant 0 : i32
    %c0_i32_1 = arith.constant 0 : i32
    return %c0_i32, %c0_i32_0 : i32, i32
  }
  func.func @transform_6(%arg0: i32) -> (i32, i32) {
    %c0_i32 = arith.constant 0 : i32
    %c0_i32_0 = arith.constant 0 : i32
    %c0_i32_1 = arith.constant 0 : i32
    return %c0_i32, %c0_i32_0 : i32, i32
  }
  func.func @transform_7(%arg0: i32) -> (i32, i32) {
    %c0_i32 = arith.constant 0 : i32
    %c0_i32_0 = arith.constant 0 : i32
    %c0_i32_1 = arith.constant 0 : i32
    return %c0_i32, %c0_i32_0 : i32, i32
  }
  func.func @transform_8(%arg0: i32) -> (i32, i32) {
    %c0_i32 = arith.constant 0 : i32
    %c0_i32_0 = arith.constant 0 : i32
    %c0_i32_1 = arith.constant 0 : i32
    return %c0_i32, %c0_i32_0 : i32, i32
  }
  func.func @transform_9(%arg0: i32) -> (i32, i32) {
    %c0_i32 = arith.constant 0 : i32
    %c0_i32_0 = arith.constant 0 : i32
    return %arg0, %c0_i32 : i32, i32
  }
}

</mosaic_0001>

<bundles_post_ra>
// kernel: poker_network_forward.1
= control target key start
LH: loop header
LB: loop body
LE: loop exit
PB: predicated region body
PF: predicated region fallthrough
CT: control target
= control target key end

     0   :  { %vm149_vm0 = vcmask 261120   ;;  %s3767_s1 = inlined_call_operand.vmem [shape: bf16[32,128], index: 1, kind: input, shape index: {}]   ;;  %s3768_s0 = inlined_call_operand.vmem [shape: f32[512,32], index: 0, kind: input, shape index: {}]   ;;  %s3769_s2 = inlined_call_operand.vmem [shape: f32[1,128], index: 2, kind: input, shape index: {}]   ;;  %s3770_s3 = inlined_call_operand.vmem [shape: bf16[128,128], index: 3, kind: input, shape index: {}]   ;;  %s3771_s4 = inlined_call_operand.vmem [shape: f32[1,128], index: 4, kind: input, shape index: {}]   ;;  %s3772_s5 = inlined_call_operand.vmem [shape: bf16[128,256], index: 5, kind: input, shape index: {}]   ;;  %s3773_s7 = inlined_call_operand.vmem [shape: bf16[256,128], index: 7, kind: input, shape index: {}]   ;;  %s3774_s6 = inlined_call_operand.vmem [shape: f32[1,256], index: 6, kind: input, shape index: {}]   ;;  %s3775_s8 = inlined_call_operand.vmem [shape: f32[1,128], index: 8, kind: input, shape index: {}]   ;;  %s3776_s9 = inlined_call_operand.vmem [shape: bf16[512,128], index: 9, kind: output, shape index: {}]  }
   0x1   :  { %v2279_v0 = vld [vmem:[%s3767_s1 + $0x8] sm:$0xff]  ;;  %v2278_v1 = vld [vmem:[%s3767_s1] sm:$0xff]  ;;  %v67_v5 = vld [vmem:[%s3768_s0 + $0x110] sm:$0xff] }
   0x2   :  { %252 = vmatpush.bf16.msra.mxu0 %v2279_v0  ;;  %v33_v2 = vld [vmem:[%s3768_s0] sm:$0xff]  ;;  %v34_v3 = vld [vmem:[%s3768_s0 + $0x8] sm:$0xff]  ;;  %2511 = vmatpush.bf16.msra.mxu3 %v2279_v0  ;;  %v68_v6 = vld [vmem:[%s3768_s0 + $0x118] sm:$0xff] }
   0x3   :  { %v97_v4 = vpack.c.bf16 %v34_v3, %v33_v2  ;;  %v114_v7 = vpack.c.bf16 %v68_v6, %v67_v5  ;;  %v35_v8 = vld [vmem:[%s3768_s0 + $0x10] sm:$0xff]  ;;  %v36_v9 = vld [vmem:[%s3768_s0 + $0x18] sm:$0xff]  ;;  %v69_v11 = vld [vmem:[%s3768_s0 + $0x120] sm:$0xff] }
   0x4   :  { %v98_v10 = vpack.c.bf16 %v36_v9, %v35_v8  ;;  %v70_v12 = vld [vmem:[%s3768_s0 + $0x128] sm:$0xff]  ;;  %v37_v14 = vld [vmem:[%s3768_s0 + $0x20] sm:$0xff]  ;;  %v71_v17 = vld [vmem:[%s3768_s0 + $0x130] sm:$0xff] }
   0x5   :  { %v115_v13 = vpack.c.bf16 %v70_v12, %v69_v11  ;;  %v38_v15 = vld [vmem:[%s3768_s0 + $0x28] sm:$0xff]  ;;  %v72_v18 = vld [vmem:[%s3768_s0 + $0x138] sm:$0xff]  ;;  %v39_v20 = vld [vmem:[%s3768_s0 + $0x30] sm:$0xff] }
   0x6   :  { %253 = vmatpush.bf16.msra.mxu0 %v2278_v1  ;;  %2512 = vmatpush.bf16.msra.mxu3 %v2278_v1  ;;  %v99_v16 = vpack.c.bf16 %v38_v15, %v37_v14  ;;  %v116_v19 = vpack.c.bf16 %v72_v18, %v71_v17  ;;  %v40_v21 = vld [vmem:[%s3768_s0 + $0x38] sm:$0xff]  ;;  %v73_v23 = vld [vmem:[%s3768_s0 + $0x140] sm:$0xff]  ;;  %v74_v24 = vld [vmem:[%s3768_s0 + $0x148] sm:$0xff] }
   0x7   :  { %v100_v22 = vpack.c.bf16 %v40_v21, %v39_v20  ;;  %v117_v25 = vpack.c.bf16 %v74_v24, %v73_v23  ;;  %v41_v26 = vld [vmem:[%s3768_s0 + $0x40] sm:$0xff]  ;;  %v42_v27 = vld [vmem:[%s3768_s0 + $0x48] sm:$0xff]  ;;  %v75_v29 = vld [vmem:[%s3768_s0 + $0x150] sm:$0xff] }
   0x8   :  { %v101_v28 = vpack.c.bf16 %v42_v27, %v41_v26  ;;  %v76_v30 = vld [vmem:[%s3768_s0 + $0x158] sm:$0xff]  ;;  %v43_v33 = vld [vmem:[%s3768_s0 + $0x50] sm:$0xff]  ;;  %v77_v37 = vld [vmem:[%s3768_s0 + $0x160] sm:$0xff] }
   0x9   :  { %2086 = vmatmul.msk.bf16.vlgmr.msra.gmra.mxu0 %vm149_vm0, %v97_v4  ;;  %2103 = vmatmul.msk.bf16.vlgmr.msra.gmra.mxu3 %vm149_vm0, %v114_v7  ;;  %v2287_v31 = vld [vmem:[%s3770_s3 + $0x38] sm:$0xff]  ;;  %v118_v32 = vpack.c.bf16 %v76_v30, %v75_v29  ;;  %v2286_v36 = vld [vmem:[%s3770_s3 + $0x30] sm:$0xff]  ;;  %v78_v38 = vld [vmem:[%s3768_s0 + $0x168] sm:$0xff] }
   0xa   :  { %579 = vmatpush.bf16.msra.mxu1 %v2287_v31  ;;  %2513 = vmatpush.bf16.msra.mxu2 %v2287_v31  ;;  %v44_v34 = vld [vmem:[%s3768_s0 + $0x58] sm:$0xff]  ;;  %v2285_v39 = vld [vmem:[%s3770_s3 + $0x28] sm:$0xff]  ;;  %v119_v40 = vpack.c.bf16 %v78_v38, %v77_v37  ;;  %v2284_v41 = vld [vmem:[%s3770_s3 + $0x20] sm:$0xff] }
   0xb   :  { %v102_v35 = vpack.c.bf16 %v44_v34, %v43_v33  ;;  %v45_v42 = vld [vmem:[%s3768_s0 + $0x60] sm:$0xff]  ;;  %v46_v43 = vld [vmem:[%s3768_s0 + $0x68] sm:$0xff]  ;;  %v2283_v44 = vld [vmem:[%s3770_s3 + $0x18] sm:$0xff] }
   0xc   :  { %v103_v45 = vpack.c.bf16 %v46_v43, %v45_v42  ;;  %v2282_v46 = vld [vmem:[%s3770_s3 + $0x10] sm:$0xff]  ;;  %v2281_v47 = vld [vmem:[%s3770_s3 + $0x8] sm:$0xff]  ;;  %v80_v49 = vld [vmem:[%s3768_s0 + $0x178] sm:$0xff] }
   0xd   :  { %v79_v48 = vld [vmem:[%s3768_s0 + $0x170] sm:$0xff]  ;;  %v2280_v51 = vld [vmem:[%s3770_s3] sm:$0xff]  ;;  %v48_v53 = vld [vmem:[%s3768_s0 + $0x78] sm:$0xff] }
   0xe   :  { %580 = vmatpush.bf16.msra.mxu1 %v2286_v36  ;;  %2514 = vmatpush.bf16.msra.mxu2 %v2286_v36  ;;  %v120_v50 = vpack.c.bf16 %v80_v49, %v79_v48  ;;  %v47_v52 = vld [vmem:[%s3768_s0 + $0x70] sm:$0xff]  ;;  %v81_v55 = vld [vmem:[%s3768_s0 + $0x180] sm:$0xff]  ;;  %v82_v56 = vld [vmem:[%s3768_s0 + $0x188] sm:$0xff] }
   0xf   :  { %v104_v54 = vpack.c.bf16 %v48_v53, %v47_v52  ;;  %v121_v57 = vpack.c.bf16 %v82_v56, %v81_v55  ;;  %v49_v58 = vld [vmem:[%s3768_s0 + $0x80] sm:$0xff]  ;;  %v50_v59 = vld [vmem:[%s3768_s0 + $0x88] sm:$0xff]  ;;  %v83_v1 = vld [vmem:[%s3768_s0 + $0x190] sm:$0xff] }
  0x10   :  { %v105_v60 = vpack.c.bf16 %v50_v59, %v49_v58  ;;  %v2728_v62 = vld [vmem:[%s3769_s2] ss:$0 sm:$0xff]  ;;  %v84_v2 = vld [vmem:[%s3768_s0 + $0x198] sm:$0xff]  ;;  %v51_v8 = vld [vmem:[%s3768_s0 + $0x90] sm:$0xff] }
  0x11   :  { %v122_v4 = vpack.c.bf16 %v84_v2, %v83_v1  ;;  %v52_v9 = vld [vmem:[%s3768_s0 + $0x98] sm:$0xff]  ;;  %v86_v17 = vld [vmem:[%s3768_s0 + $0x1a8] sm:$0xff]  ;;  %v53_v23 = vld [vmem:[%s3768_s0 + $0xa0] sm:$0xff] }
  0x12   :  { %581 = vmatpush.bf16.msra.mxu1 %v2285_v39  ;;  %2515 = vmatpush.bf16.msra.mxu2 %v2285_v39  ;;  %v106_v11 = vpack.c.bf16 %v52_v9, %v51_v8  ;;  %v54_v24 = vld [vmem:[%s3768_s0 + $0xa8] sm:$0xff]  ;;  %v87_v31 = vld [vmem:[%s3768_s0 + $0x1b0] sm:$0xff]  ;;  %v56_v39 = vld [vmem:[%s3768_s0 + $0xb8] sm:$0xff] }
  0x13   :  { %v107_v26 = vpack.c.bf16 %v54_v24, %v53_v23  ;;  %v55_v38 = vld [vmem:[%s3768_s0 + $0xb0] sm:$0xff]  ;;  %v57_v53 = vld [vmem:[%s3768_s0 + $0xc0] sm:$0xff] }
  0x16   :  { %582 = vmatpush.bf16.msra.mxu1 %v2284_v41  ;;  %2516 = vmatpush.bf16.msra.mxu2 %v2284_v41  ;;  %v108_v41 = vpack.c.bf16 %v56_v39, %v55_v38 }
  0x19   :  { %2087 = vmatmul.msk.bf16.gmra.mxu0 %vm149_vm0, %v98_v10  ;;  %2104 = vmatmul.msk.bf16.gmra.mxu3 %vm149_vm0, %v115_v13 }
  0x1a   :  { %583 = vmatpush.bf16.msra.mxu1 %v2283_v44  ;;  %2517 = vmatpush.bf16.msra.mxu2 %v2283_v44 }
  0x1e   :  { %584 = vmatpush.bf16.msra.mxu1 %v2282_v46  ;;  %2518 = vmatpush.bf16.msra.mxu2 %v2282_v46  ;;  %v89_v46 = vld [vmem:[%s3768_s0 + $0x1c0] sm:$0xff] }
  0x22   :  { %585 = vmatpush.bf16.msra.mxu1 %v2281_v47  ;;  %2519 = vmatpush.bf16.msra.mxu2 %v2281_v47  ;;  %v90_v47 = vld [vmem:[%s3768_s0 + $0x1c8] sm:$0xff] }
  0x23   :  { %v125_v49 = vpack.c.bf16 %v90_v47, %v89_v46  ;;  %v95_v46 = vld [vmem:[%s3768_s0 + $0x1f0] sm:$0xff]  ;;  %v96_v47 = vld [vmem:[%s3768_s0 + $0x1f8] sm:$0xff] }
  0x26   :  { %586 = vmatpush.bf16.msra.mxu1 %v2280_v51  ;;  %2520 = vmatpush.bf16.msra.mxu2 %v2280_v51 }
  0x29   :  { %2088 = vmatmul.msk.bf16.gmra.mxu0 %vm149_vm0, %v99_v16  ;;  %2105 = vmatmul.msk.bf16.gmra.mxu3 %vm149_vm0, %v116_v19  ;;  %v85_v16 = vld [vmem:[%s3768_s0 + $0x1a0] sm:$0xff] }
  0x2a   :  { %v123_v19 = vpack.c.bf16 %v86_v17, %v85_v16  ;;  %v94_v16 = vld [vmem:[%s3768_s0 + $0x1e8] sm:$0xff] }
  0x39   :  { %2089 = vmatmul.msk.bf16.gmra.mxu0 %vm149_vm0, %v100_v22  ;;  %2106 = vmatmul.msk.bf16.gmra.mxu3 %vm149_vm0, %v117_v25 }
  0x49   :  { %2090 = vmatmul.msk.bf16.gmra.mxu0 %vm149_vm0, %v101_v28  ;;  %2107 = vmatmul.msk.bf16.gmra.mxu3 %vm149_vm0, %v118_v32  ;;  %v88_v32 = vld [vmem:[%s3768_s0 + $0x1b8] sm:$0xff] }
  0x4a   :  { %v124_v34 = vpack.c.bf16 %v88_v32, %v87_v31  ;;  %v2202_v31 = vld [vmem:[%s3772_s5 + $0x68] sm:$0xf0] }
  0x59   :  { %2091 = vmatmul.msk.bf16.gmra.mxu0 %vm149_vm0, %v102_v35  ;;  %2108 = vmatmul.msk.bf16.gmra.mxu3 %vm149_vm0, %v119_v40 }
  0x69   :  { %2092 = vmatmul.msk.bf16.gmra.mxu0 %vm149_vm0, %v103_v45  ;;  %2109 = vmatmul.msk.bf16.gmra.mxu3 %vm149_vm0, %v120_v50 }
  0x79   :  { %2093 = vmatmul.msk.bf16.gmra.mxu0 %vm149_vm0, %v104_v54  ;;  %2110 = vmatmul.msk.bf16.gmra.mxu3 %vm149_vm0, %v121_v57  ;;  %v58_v54 = vld [vmem:[%s3768_s0 + $0xc8] sm:$0xff] }
  0x7a   :  { %v109_v56 = vpack.c.bf16 %v58_v54, %v57_v53 }
  0x86   :  { %v255_v61 = vpop.f32.mrf.mxu0 }
  0x87   :  { %v256_v63 = vadd.f32 %v2728_v62, %v255_v61  ;;  %v91_v61 = vld [vmem:[%s3768_s0 + $0x1d0] sm:$0xff] }
  0x89   :  { %2094 = vmatmul.msk.bf16.gmra.mxu0 %vm149_vm0, %v105_v60  ;;  %v415_v5 = vmax.f32 %v256_v63, 0.0  ;;  %2111 = vmatmul.msk.bf16.gmra.mxu3 %vm149_vm0, %v122_v4  ;;  %v92_v63 = vld [vmem:[%s3768_s0 + $0x1d8] sm:$0xff] }
  0x8a   :  { %v126_v1 = vpack.c.bf16 %v92_v63, %v91_v61  ;;  %v2170_v61 = vld [vmem:[%s3772_s5 + $0x28] sm:$0xf0] }
  0x8c   :  { %v2740_v7 = vpop.f32.mrf.mxu3 }
  0x8e   :  { %v257_v0 = vpop.f32.mrf.mxu0 }
  0x8f   :  { %v258_v3 = vadd.f32 %v2728_v62, %v257_v0 }
  0x91   :  { %v416_v6 = vmax.f32 %v258_v3, 0.0 }
  0x93   :  { %v479_v10 = vpack.c.bf16 %v416_v6, %v415_v5  ;;  %v59_v5 = vld [vmem:[%s3768_s0 + $0xd0] sm:$0xff]  ;;  %v60_v6 = vld [vmem:[%s3768_s0 + $0xd8] sm:$0xff] }
  0x94   :  { %v2749_v13 = vpop.f32.mrf.mxu3  ;;  %v110_v9 = vpack.c.bf16 %v60_v6, %v59_v5  ;;  %v2162_v5 = vld [vmem:[%s3772_s5 + $0x18] sm:$0xf0] }
  0x95   :  { %587 = vmatmul.bf16.vlgmr.msra.gmra.mxu1 %v479_v10 }
  0x96   :  { %v260_v12 = vpop.f32.mrf.mxu0 }
  0x97   :  { %v261_v14 = vadd.f32 %v2728_v62, %v260_v12 }
  0x99   :  { %2095 = vmatmul.msk.bf16.gmra.mxu0 %vm149_vm0, %v106_v11  ;;  %v417_v20 = vmax.f32 %v261_v14, 0.0  ;;  %2112 = vmatmul.msk.bf16.gmra.mxu3 %vm149_vm0, %v123_v19  ;;  %v2302_v19 = vld [vmem:[%s3772_s5 + $0x74] sm:$0xf] }
  0x9c   :  { %v2760_v22 = vpop.f32.mrf.mxu3 }
  0x9e   :  { %v262_v15 = vpop.f32.mrf.mxu0 }
  0x9f   :  { %v263_v18 = vadd.f32 %v2728_v62, %v262_v15  ;;  %v93_v15 = vld [vmem:[%s3768_s0 + $0x1e0] sm:$0xff] }
  0xa1   :  { %v418_v21 = vmax.f32 %v263_v18, 0.0  ;;  %v127_v18 = vpack.c.bf16 %v94_v16, %v93_v15 }
  0xa3   :  { %v480_v25 = vpack.c.bf16 %v418_v21, %v417_v20  ;;  %v2210_v20 = vld [vmem:[%s3772_s5 + $0x78] sm:$0xf0] }
  0xa4   :  { %v2769_v28 = vpop.f32.mrf.mxu3  ;;  %v2213_v21 = vor.u32 %v2302_v19, %v2210_v20  ;;  %v65_v19 = vld [vmem:[%s3768_s0 + $0x100] sm:$0xff]  ;;  %v66_v20 = vld [vmem:[%s3768_s0 + $0x108] sm:$0xff] }
  0xa5   :  { %592 = vmatmul.bf16.gmra.mxu1 %v480_v25 }
  0xa6   :  { %v265_v27 = vpop.f32.mrf.mxu0  ;;  %1115 = vmatpush.bf16.msrb.mxu3 %v2213_v21 }
  0xa7   :  { %v266_v29 = vadd.f32 %v2728_v62, %v265_v27  ;;  %v62_v27 = vld [vmem:[%s3768_s0 + $0xe8] sm:$0xff] }
  0xa9   :  { %2096 = vmatmul.msk.bf16.gmra.mxu0 %vm149_vm0, %v107_v26  ;;  %v419_v35 = vmax.f32 %v266_v29, 0.0  ;;  %2113 = vmatmul.msk.bf16.gmra.mxu3 %vm149_vm0, %v124_v34  ;;  %v61_v26 = vld [vmem:[%s3768_s0 + $0xe0] sm:$0xff] }
  0xac   :  { %v2780_v37 = vpop.f32.mrf.mxu3 }
  0xae   :  { %v267_v30 = vpop.f32.mrf.mxu0 }
  0xaf   :  { %v268_v33 = vadd.f32 %v2728_v62, %v267_v30  ;;  %v2300_v30 = vld [vmem:[%s3772_s5 + $0x64] sm:$0xf] }
  0xb0   :  { %v2205_v32 = vor.u32 %v2300_v30, %v2202_v31 }
  0xb1   :  { %v420_v36 = vmax.f32 %v268_v33, 0.0  ;;  %v111_v33 = vpack.c.bf16 %v62_v27, %v61_v26 }
  0xb2   :  { %1116 = vmatpush.bf16.msrb.mxu3 %v2205_v32 }
  0xb3   :  { %v481_v40 = vpack.c.bf16 %v420_v36, %v419_v35  ;;  %v2298_v35 = vld [vmem:[%s3772_s5 + $0x54] sm:$0xf]  ;;  %v2194_v36 = vld [vmem:[%s3772_s5 + $0x58] sm:$0xf0] }
  0xb4   :  { %v2789_v43 = vpop.f32.mrf.mxu3  ;;  %v2197_v38 = vor.u32 %v2298_v35, %v2194_v36  ;;  %v2937_v36 = vld [vmem:[%s3771_s4] ss:$0 sm:$0xff] }
  0xb5   :  { %597 = vmatmul.bf16.gmra.mxu1 %v481_v40  ;;  %v2296_v40 = vld [vmem:[%s3772_s5 + $0x44] sm:$0xf] }
  0xb6   :  { %v270_v42 = vpop.f32.mrf.mxu0  ;;  %1117 = vmatpush.bf16.msrb.mxu3 %v2197_v38 }
  0xb7   :  { %v271_v44 = vadd.f32 %v2728_v62, %v270_v42 }
  0xb9   :  { %2097 = vmatmul.msk.bf16.gmra.mxu0 %vm149_vm0, %v108_v41  ;;  %v421_v50 = vmax.f32 %v271_v44, 0.0  ;;  %2114 = vmatmul.msk.bf16.gmra.mxu3 %vm149_vm0, %v125_v49  ;;  %v2186_v41 = vld [vmem:[%s3772_s5 + $0x48] sm:$0xf0]  ;;  %v128_v49 = vpack.c.bf16 %v96_v47, %v95_v46 }
  0xba   :  { %v2189_v42 = vor.u32 %v2296_v40, %v2186_v41 }
  0xbc   :  { %v2800_v52 = vpop.f32.mrf.mxu3  ;;  %1118 = vmatpush.bf16.msrb.mxu3 %v2189_v42 }
  0xbe   :  { %v272_v45 = vpop.f32.mrf.mxu0 }
  0xbf   :  { %v273_v48 = vadd.f32 %v2728_v62, %v272_v45 }
  0xc1   :  { %v422_v51 = vmax.f32 %v273_v48, 0.0 }
  0xc3   :  { %v482_v55 = vpack.c.bf16 %v422_v51, %v421_v50  ;;  %v2294_v50 = vld [vmem:[%s3772_s5 + $0x34] sm:$0xf]  ;;  %v2178_v51 = vld [vmem:[%s3772_s5 + $0x38] sm:$0xf0] }
  0xc4   :  { %v2809_v58 = vpop.f32.mrf.mxu3  ;;  %v2181_v53 = vor.u32 %v2294_v50, %v2178_v51 }
  0xc5   :  { %602 = vmatmul.bf16.gmra.mxu1 %v482_v55 }
  0xc6   :  { %v275_v57 = vpop.f32.mrf.mxu0  ;;  %1119 = vmatpush.bf16.msrb.mxu3 %v2181_v53 }
  0xc7   :  { %v276_v59 = vadd.f32 %v2728_v62, %v275_v57  ;;  %v64_v57 = vld [vmem:[%s3768_s0 + $0xf8] sm:$0xff] }
  0xc9   :  { %2098 = vmatmul.msk.bf16.gmra.mxu0 %vm149_vm0, %v109_v56  ;;  %v423_v2 = vmax.f32 %v276_v59, 0.0  ;;  %2115 = vmatmul.msk.bf16.gmra.mxu3 %vm149_vm0, %v126_v1  ;;  %v63_v56 = vld [vmem:[%s3768_s0 + $0xf0] sm:$0xff] }
  0xca   :  { %v112_v1 = vpack.c.bf16 %v64_v57, %v63_v56 }
  0xcc   :  { %v2820_v4 = vpop.f32.mrf.mxu3 }
  0xce   :  { %v277_v60 = vpop.f32.mrf.mxu0 }
  0xcf   :  { %v278_v0 = vadd.f32 %v2728_v62, %v277_v60  ;;  %v2292_v60 = vld [vmem:[%s3772_s5 + $0x24] sm:$0xf] }
  0xd1   :  { %v424_v3 = vmax.f32 %v278_v0, 0.0  ;;  %v2173_v0 = vor.u32 %v2292_v60, %v2170_v61 }
  0xd3   :  { %v483_v8 = vpack.c.bf16 %v424_v3, %v423_v2  ;;  %1120 = vmatpush.bf16.msrb.mxu3 %v2173_v0  ;;  %v2290_v3 = vld [vmem:[%s3772_s5 + $0x14] sm:$0xf] }
  0xd4   :  { %v2829_v11 = vpop.f32.mrf.mxu3  ;;  %v2165_v6 = vor.u32 %v2290_v3, %v2162_v5 }
  0xd5   :  { %607 = vmatmul.bf16.gmra.mxu1 %v483_v8  ;;  %v2288_v8 = vld [vmem:[%s3772_s5 + $0x4] sm:$0xf] }
  0xd6   :  { %v280_v10 = vpop.f32.mrf.mxu0 }
  0xd7   :  { %v281_v12 = vadd.f32 %v2728_v62, %v280_v10  ;;  %1121 = vmatpush.bf16.msrb.mxu3 %v2165_v6 }
  0xd9   :  { %2099 = vmatmul.msk.bf16.gmra.mxu0 %vm149_vm0, %v110_v9  ;;  %v425_v23 = vmax.f32 %v281_v12, 0.0  ;;  %2116 = vmatmul.msk.bf16.gmra.mxu3 %vm149_vm0, %v127_v18  ;;  %v2154_v9 = vld [vmem:[%s3772_s5 + $0x8] sm:$0xf0] }
  0xda   :  { %v2157_v12 = vor.u32 %v2288_v8, %v2154_v9 }
  0xdc   :  { %v2846_v25 = vpop.f32.mrf.mxu3  ;;  %1122 = vmatpush.bf16.msrb.mxu3 %v2157_v12 }
  0xde   :  { %v282_v14 = vpop.f32.mrf.mxu0 }
  0xdf   :  { %v283_v17 = vadd.f32 %v2728_v62, %v282_v14 }
  0xe1   :  { %v426_v24 = vmax.f32 %v283_v17, 0.0 }
  0xe3   :  { %v484_v29 = vpack.c.bf16 %v426_v24, %v425_v23  ;;  %v113_v24 = vpack.c.bf16 %v66_v20, %v65_v19 }
  0xe4   :  { %v2867_v39 = vpop.f32.mrf.mxu3 }
  0xe5   :  { %612 = vmatmul.bf16.gmra.mxu1 %v484_v29 }
  0xe6   :  { %v285_v34 = vpop.f32.mrf.mxu0 }
  0xe7   :  { %v286_v44 = vadd.f32 %v2728_v62, %v285_v34 }
  0xe9   :  { %2100 = vmatmul.msk.bf16.gmra.mxu0 %vm149_vm0, %v111_v33  ;;  %v427_v54 = vmax.f32 %v286_v44, 0.0  ;;  %2117 = vmatmul.msk.bf16.gmra.mxu3 %vm149_vm0, %v128_v49 }
  0xec   :  { %v2902_v63 = vpop.f32.mrf.mxu3 }
  0xee   :  { %v287_v45 = vpop.f32.mrf.mxu0 }
  0xef   :  { %v288_v48 = vadd.f32 %v2728_v62, %v287_v45 }
  0xf1   :  { %v428_v55 = vmax.f32 %v288_v48, 0.0 }
  0xf3   :  { %v485_v59 = vpack.c.bf16 %v428_v55, %v427_v54 }
  0xf4   :  { %v2917_v10 = vpop.f32.mrf.mxu3 }
  0xf5   :  { %617 = vmatmul.bf16.gmra.mxu1 %v485_v59 }
  0xf6   :  { %v290_v2 = vpop.f32.mrf.mxu0 }
  0xf7   :  { %v291_v14 = vadd.f32 %v2728_v62, %v290_v2 }
  0xf9   :  { %2101 = vmatmul.msk.bf16.gmra.mxu0 %vm149_vm0, %v112_v1  ;;  %v429_v17 = vmax.f32 %v291_v14, 0.0 }
  0xfc   :  { %v2927_v23 = vpop.f32.mrf.mxu3 }
  0xfe   :  { %v292_v15 = vpop.f32.mrf.mxu0 }
  0xff   :  { %v293_v16 = vadd.f32 %v2728_v62, %v292_v15 }
 0x101   :  { %v430_v18 = vmax.f32 %v293_v16, 0.0 }
 0x103   :  { %v486_v21 = vpack.c.bf16 %v430_v18, %v429_v17 }
 0x104   :  { %v2931_v30 = vpop.f32.mrf.mxu3 }
 0x105   :  { %622 = vmatmul.bf16.gmra.mxu1 %v486_v21 }
 0x106   :  { %v295_v26 = vpop.f32.mrf.mxu0 }
 0x107   :  { %v296_v27 = vadd.f32 %v2728_v62, %v295_v26 }
 0x109   :  { %2102 = vmatmul.msk.bf16.gmra.mxu0 %vm149_vm0, %v113_v24  ;;  %v431_v32 = vmax.f32 %v296_v27, 0.0 }
 0x10c   :  { %v2939_v40 = vpop.f32.mrf.mxu3 }
 0x10e   :  { %v297_v29 = vpop.f32.mrf.mxu0 }
 0x10f   :  { %v298_v31 = vadd.f32 %v2728_v62, %v297_v29 }
 0x111   :  { %v432_v33 = vmax.f32 %v298_v31, 0.0 }
 0x112   :  { %v588_v34 = vpop.f32.mrf.mxu1 }
 0x113   :  { %v487_v35 = vpack.c.bf16 %v432_v33, %v431_v32  ;;  %v589_v41 = vadd.f32 %v2937_v36, %v588_v34 }
 0x114   :  { %v2948_v55 = vpop.f32.mrf.mxu3 }
 0x115   :  { %627 = vmatmul.bf16.gmra.mxu1 %v487_v35  ;;  %v748_v45 = vmax.f32 %v589_v41, 0.0 }
 0x116   :  { %v300_v38 = vpop.f32.mrf.mxu0 }
 0x117   :  { %v301_v46 = vadd.f32 %v2728_v62, %v300_v38 }
 0x119   :  { %v433_v51 = vmax.f32 %v301_v46, 0.0 }
 0x11a   :  { %v590_v42 = vpop.f32.mrf.mxu1 }
 0x11b   :  { %v591_v44 = vadd.f32 %v2937_v36, %v590_v42 }
 0x11c   :  { %v2952_v0 = vpop.f32.mrf.mxu3 }
 0x11d   :  { %v749_v47 = vmax.f32 %v591_v44, 0.0 }
 0x11e   :  { %v302_v48 = vpop.f32.mrf.mxu0 }
 0x11f   :  { %v2944_v49 = vpack.c.bf16 %v749_v47, %v748_v45  ;;  %v303_v50 = vadd.f32 %v2728_v62, %v302_v48 }
 0x121   :  { %v434_v53 = vmax.f32 %v303_v50, 0.0  ;;  %1123 = vmatmul.bf16.vlgmr.msrb.gmra.mxu3 %v2944_v49 }
 0x122   :  { %v593_v54 = vpop.f32.mrf.mxu1 }
 0x123   :  { %v488_v56 = vpack.c.bf16 %v434_v53, %v433_v51  ;;  %v594_v59 = vadd.f32 %v2937_v36, %v593_v54 }
 0x124   :  { %v2959_v17 = vpop.f32.mrf.mxu3 }
 0x125   :  { %632 = vmatmul.bf16.gmra.mxu1 %v488_v56  ;;  %v750_v1 = vmax.f32 %v594_v59, 0.0 }
 0x126   :  { %v305_v57 = vpop.f32.mrf.mxu0 }
 0x127   :  { %v306_v2 = vadd.f32 %v2728_v62, %v305_v57 }
 0x129   :  { %v435_v9 = vmax.f32 %v306_v2, 0.0 }
 0x12a   :  { %v595_v60 = vpop.f32.mrf.mxu1 }
 0x12b   :  { %v596_v61 = vadd.f32 %v2937_v36, %v595_v60 }
 0x12c   :  { %v2967_v32 = vpop.f32.mrf.mxu3 }
 0x12d   :  { %v751_v3 = vmax.f32 %v596_v61, 0.0 }
 0x12e   :  { %v307_v5 = vpop.f32.mrf.mxu0 }
 0x12f   :  { %v308_v6 = vadd.f32 %v2728_v62, %v307_v5  ;;  %v2956_v8 = vpack.c.bf16 %v751_v3, %v750_v1 }
 0x131   :  { %v436_v12 = vmax.f32 %v308_v6, 0.0  ;;  %1128 = vmatmul.bf16.gmra.mxu3 %v2956_v8 }
 0x132   :  { %v598_v14 = vpop.f32.mrf.mxu1 }
 0x133   :  { %v489_v15 = vpack.c.bf16 %v436_v12, %v435_v9  ;;  %v599_v18 = vadd.f32 %v2937_v36, %v598_v14 }
 0x134   :  { %v2971_v45 = vpop.f32.mrf.mxu3 }
 0x135   :  { %637 = vmatmul.bf16.gmra.mxu1 %v489_v15  ;;  %v752_v21 = vmax.f32 %v599_v18, 0.0 }
 0x136   :  { %v310_v16 = vpop.f32.mrf.mxu0 }
 0x137   :  { %v311_v24 = vadd.f32 %v2728_v62, %v310_v16 }
 0x139   :  { %v437_v33 = vmax.f32 %v311_v24, 0.0 }
 0x13a   :  { %v600_v19 = vpop.f32.mrf.mxu1 }
 0x13b   :  { %v601_v20 = vadd.f32 %v2937_v36, %v600_v19 }
 0x13c   :  { %v2979_v61 = vpop.f32.mrf.mxu3 }
 0x13d   :  { %v753_v26 = vmax.f32 %v601_v20, 0.0 }
 0x13e   :  { %v312_v27 = vpop.f32.mrf.mxu0 }
 0x13f   :  { %v313_v29 = vadd.f32 %v2728_v62, %v312_v27  ;;  %v2965_v31 = vpack.c.bf16 %v753_v26, %v752_v21 }
 0x141   :  { %v438_v34 = vmax.f32 %v313_v29, 0.0  ;;  %1133 = vmatmul.bf16.gmra.mxu3 %v2965_v31 }
 0x142   :  { %v603_v35 = vpop.f32.mrf.mxu1 }
 0x143   :  { %v490_v38 = vpack.c.bf16 %v438_v34, %v437_v33  ;;  %v604_v42 = vadd.f32 %v2937_v36, %v603_v35 }
 0x144   :  { %v2984_v15 = vpop.f32.mrf.mxu3 }
 0x145   :  { %642 = vmatmul.bf16.gmra.mxu1 %v490_v38  ;;  %v754_v47 = vmax.f32 %v604_v42, 0.0 }
 0x146   :  { %v315_v41 = vpop.f32.mrf.mxu0 }
 0x147   :  { %v316_v48 = vadd.f32 %v2728_v62, %v315_v41 }
 0x149   :  { %v439_v56 = vmax.f32 %v316_v48, 0.0 }
 0x14a   :  { %v605_v44 = vpop.f32.mrf.mxu1 }
 0x14b   :  { %v606_v46 = vadd.f32 %v2937_v36, %v605_v44 }
 0x14c   :  { %v2990_v27 = vpop.f32.mrf.mxu3 }
 0x14d   :  { %v755_v50 = vmax.f32 %v606_v46, 0.0 }
 0x14e   :  { %v317_v51 = vpop.f32.mrf.mxu0 }
 0x14f   :  { %v318_v53 = vadd.f32 %v2728_v62, %v317_v51  ;;  %v2976_v54 = vpack.c.bf16 %v755_v50, %v754_v47 }
 0x151   :  { %v440_v57 = vmax.f32 %v318_v53, 0.0  ;;  %1138 = vmatmul.bf16.gmra.mxu3 %v2976_v54  ;;  %v2319_v53 = vld [vmem:[%s3773_s7 + $0x78] sm:$0xff] }
 0x152   :  { %v608_v59 = vpop.f32.mrf.mxu1  ;;  %1777 = vmatpush.bf16.msrb.mxu1 %v2319_v53 }
 0x153   :  { %v491_v60 = vpack.c.bf16 %v440_v57, %v439_v56  ;;  %v609_v2 = vadd.f32 %v2937_v36, %v608_v59  ;;  %v341_v56 = vadd.f32 %v2728_v62, %v2740_v7  ;;  %v343_v57 = vadd.f32 %v2728_v62, %v2749_v13 }
 0x154   :  { %v2999_v51 = vpop.f32.mrf.mxu3 }
 0x155   :  { %647 = vmatmul.bf16.gmra.mxu1 %v491_v60  ;;  %v756_v6 = vmax.f32 %v609_v2, 0.0  ;;  %v2208_v60 = vld [vmem:[%s3772_s5 + $0x70] sm:$0xf] }
 0x156   :  { %v320_v1 = vpop.f32.mrf.mxu0  ;;  %v2318_v2 = vld [vmem:[%s3773_s7 + $0x70] sm:$0xff] }
 0x157   :  { %v321_v9 = vadd.f32 %v2728_v62, %v320_v1  ;;  %v2303_v1 = vld [vmem:[%s3772_s5 + $0x74] sm:$0xf0]  ;;  %1778 = vmatpush.bf16.msrb.mxu1 %v2318_v2 }
 0x158   :  { %v2209_v7 = vor.u32 %v2303_v1, %v2208_v60 }
 0x159   :  { %v441_v19 = vmax.f32 %v321_v9, 0.0 }
 0x15a   :  { %v610_v3 = vpop.f32.mrf.mxu1  ;;  %946 = vmatpush.bf16.msrb.mxu2 %v2209_v7 }
 0x15b   :  { %v611_v5 = vadd.f32 %v2937_v36, %v610_v3 }
 0x15d   :  { %v757_v12 = vmax.f32 %v611_v5, 0.0  ;;  %v449_v5 = vmax.f32 %v341_v56, 0.0  ;;  %v2314_v56 = vld [vmem:[%s3773_s7 + $0x50] sm:$0xff] }
 0x15e   :  { %v322_v14 = vpop.f32.mrf.mxu0 }
 0x15f   :  { %v323_v16 = vadd.f32 %v2728_v62, %v322_v14  ;;  %v2987_v18 = vpack.c.bf16 %v757_v12, %v756_v6  ;;  %v450_v6 = vmax.f32 %v343_v57, 0.0  ;;  %v2317_v12 = vld [vmem:[%s3773_s7 + $0x68] sm:$0xff] }
 0x160   :  { %1779 = vmatpush.bf16.msrb.mxu1 %v2317_v12 }
 0x161   :  { %v442_v20 = vmax.f32 %v323_v16, 0.0  ;;  %1143 = vmatmul.bf16.gmra.mxu3 %v2987_v18  ;;  %v3022_v16 = vpack.c.bf16 %v450_v6, %v449_v5 }
 0x162   :  { %v613_v21 = vpop.f32.mrf.mxu1 }
 0x163   :  { %v492_v24 = vpack.c.bf16 %v442_v20, %v441_v19  ;;  %v614_v29 = vadd.f32 %v2937_v36, %v613_v21  ;;  %v3024_v19 = vpop.f32.mrf.mxu3 }
 0x165   :  { %652 = vmatmul.bf16.gmra.mxu1 %v492_v24  ;;  %v758_v35 = vmax.f32 %v614_v29, 0.0 }
 0x166   :  { %v325_v26 = vpop.f32.mrf.mxu0 }
 0x167   :  { %v326_v38 = vadd.f32 %v2728_v62, %v325_v26  ;;  %v2316_v26 = vld [vmem:[%s3773_s7 + $0x60] sm:$0xff] }
 0x168   :  { %1780 = vmatpush.bf16.msrb.mxu1 %v2316_v26  ;;  %v351_v26 = vadd.f32 %v2728_v62, %v2780_v37 }
 0x169   :  { %v443_v47 = vmax.f32 %v326_v38, 0.0 }
 0x16a   :  { %v615_v33 = vpop.f32.mrf.mxu1 }
 0x16b   :  { %v616_v34 = vadd.f32 %v2937_v36, %v615_v33  ;;  %v3041_v53 = vpop.f32.mrf.mxu3 }
 0x16d   :  { %v759_v41 = vmax.f32 %v616_v34, 0.0 }
 0x16e   :  { %v327_v42 = vpop.f32.mrf.mxu0 }
 0x16f   :  { %v328_v44 = vadd.f32 %v2728_v62, %v327_v42  ;;  %v2996_v46 = vpack.c.bf16 %v759_v41, %v758_v35  ;;  %v2315_v42 = vld [vmem:[%s3773_s7 + $0x58] sm:$0xff] }
 0x170   :  { %1781 = vmatpush.bf16.msrb.mxu1 %v2315_v42  ;;  %v2301_v42 = vld [vmem:[%s3772_s5 + $0x64] sm:$0xf0] }
 0x171   :  { %v444_v48 = vmax.f32 %v328_v44, 0.0  ;;  %1148 = vmatmul.bf16.gmra.mxu3 %v2996_v46  ;;  %v346_v44 = vadd.f32 %v2728_v62, %v2760_v22  ;;  %v2313_v22 = vld [vmem:[%s3773_s7 + $0x48] sm:$0xff] }
 0x172   :  { %v618_v50 = vpop.f32.mrf.mxu1 }
 0x173   :  { %v493_v59 = vpack.c.bf16 %v444_v48, %v443_v47  ;;  %v619_v13 = vadd.f32 %v2937_v36, %v618_v50  ;;  %v348_v47 = vadd.f32 %v2728_v62, %v2769_v28  ;;  %v451_v57 = vmax.f32 %v346_v44, 0.0 }
 0x174   :  { %1782 = vmatpush.bf16.msrb.mxu1 %v2314_v56 }
 0x175   :  { %657 = vmatmul.bf16.gmra.mxu1 %v493_v59  ;;  %v760_v20 = vmax.f32 %v619_v13, 0.0  ;;  %v452_v59 = vmax.f32 %v348_v47, 0.0  ;;  %v2312_v13 = vld [vmem:[%s3773_s7 + $0x40] sm:$0xff] }
 0x176   :  { %v330_v3 = vpop.f32.mrf.mxu0 }
 0x177   :  { %v331_v21 = vadd.f32 %v2728_v62, %v330_v3  ;;  %v497_v2 = vpack.c.bf16 %v452_v59, %v451_v57 }
 0x178   :  { %1783 = vmatpush.bf16.msrb.mxu1 %v2313_v22 }
 0x179   :  { %v445_v35 = vmax.f32 %v331_v21, 0.0 }
 0x17a   :  { %v620_v9 = vpop.f32.mrf.mxu1 }
 0x17b   :  { %v621_v14 = vadd.f32 %v2937_v36, %v620_v9 }
 0x17c   :  { %1784 = vmatpush.bf16.msrb.mxu1 %v2312_v13 }
 0x17d   :  { %v761_v24 = vmax.f32 %v621_v14, 0.0  ;;  %v3058_v14 = vpop.f32.mrf.mxu3 }
 0x17e   :  { %v332_v29 = vpop.f32.mrf.mxu0 }
 0x17f   :  { %v333_v33 = vadd.f32 %v2728_v62, %v332_v29  ;;  %v3031_v34 = vpack.c.bf16 %v761_v24, %v760_v20  ;;  %v353_v29 = vadd.f32 %v2728_v62, %v2789_v43 }
 0x181   :  { %v446_v38 = vmax.f32 %v333_v33, 0.0  ;;  %1153 = vmatmul.bf16.gmra.mxu3 %v3031_v34 }
 0x182   :  { %v623_v41 = vpop.f32.mrf.mxu1 }
 0x183   :  { %v494_v48 = vpack.c.bf16 %v446_v38, %v445_v35  ;;  %v624_v60 = vadd.f32 %v2937_v36, %v623_v41  ;;  %v453_v35 = vmax.f32 %v351_v26, 0.0  ;;  %v454_v38 = vmax.f32 %v353_v29, 0.0  ;;  %v2200_v41 = vld [vmem:[%s3772_s5 + $0x60] sm:$0xf] }
 0x184   :  { %v2201_v44 = vor.u32 %v2301_v42, %v2200_v41  ;;  %v2299_v41 = vld [vmem:[%s3772_s5 + $0x54] sm:$0xf0] }
 0x185   :  { %662 = vmatmul.bf16.gmra.mxu1 %v494_v48  ;;  %v762_v3 = vmax.f32 %v624_v60, 0.0  ;;  %v3072_v37 = vpop.f32.mrf.mxu3 }
 0x186   :  { %v335_v50 = vpop.f32.mrf.mxu0  ;;  %947 = vmatpush.bf16.msrb.mxu2 %v2201_v44 }
 0x187   :  { %v336_v7 = vadd.f32 %v2728_v62, %v335_v50  ;;  %v498_v50 = vpack.c.bf16 %v454_v38, %v453_v35  ;;  %v2192_v38 = vld [vmem:[%s3772_s5 + $0x50] sm:$0xf] }
 0x188   :  { %v2193_v42 = vor.u32 %v2299_v41, %v2192_v38 }
 0x189   :  { %v447_v20 = vmax.f32 %v336_v7, 0.0 }
 0x18a   :  { %v625_v1 = vpop.f32.mrf.mxu1  ;;  %948 = vmatpush.bf16.msrb.mxu2 %v2193_v42 }
 0x18b   :  { %v626_v28 = vadd.f32 %v2937_v36, %v625_v1  ;;  %v860_v1 = vld [vmem:[%s3774_s6] sm:$0x3] }
 0x18d   :  { %v763_v5 = vmax.f32 %v626_v28, 0.0  ;;  %v3082_v28 = vperm.slane %v860_v1, 1 }
 0x18e   :  { %v337_v6 = vpop.f32.mrf.mxu0 }
 0x18f   :  { %v338_v9 = vadd.f32 %v2728_v62, %v337_v6  ;;  %v3056_v12 = vpack.c.bf16 %v763_v5, %v762_v3 }
 0x191   :  { %v448_v21 = vmax.f32 %v338_v9, 0.0  ;;  %1158 = vmatmul.bf16.gmra.mxu3 %v3056_v12 }
 0x192   :  { %v628_v24 = vpop.f32.mrf.mxu1 }
 0x193   :  { %v495_v33 = vpack.c.bf16 %v448_v21, %v447_v20  ;;  %v629_v47 = vadd.f32 %v2937_v36, %v628_v24 }
 0x195   :  { %667 = vmatmul.bf16.vlgmr.msra.gmra.mxu2 %v495_v33  ;;  %v764_v56 = vmax.f32 %v629_v47, 0.0 }
 0x19a   :  { %v630_v48 = vpop.f32.mrf.mxu1 }
 0x19b   :  { %v631_v43 = vadd.f32 %v2937_v36, %v630_v48 }
 0x19d   :  { %v765_v57 = vmax.f32 %v631_v43, 0.0 }
 0x19f   :  { %v3075_v59 = vpack.c.bf16 %v765_v57, %v764_v56 }
 0x1a1   :  { %1163 = vmatmul.bf16.gmra.mxu3 %v3075_v59 }
 0x1a2   :  { %v633_v60 = vpop.f32.mrf.mxu1 }
 0x1a3   :  { %v634_v3 = vadd.f32 %v2937_v36, %v633_v60 }
 0x1a4   :  { %v1124_v22 = vpop.f32.mrf.mxu3 }
 0x1a5   :  { %672 = vmatmul.bf16.gmra.mxu2 %v3022_v16  ;;  %v1125_v5 = vadd.f32 %v1124_v22, %v3082_v28  ;;  %v766_v9 = vmax.f32 %v634_v3, 0.0 }
 0x1a7   :  { %v1285_v24 = vmax.f32 %v1125_v5, 0.0 }
 0x1aa   :  { %v635_v7 = vpop.f32.mrf.mxu1 }
 0x1ab   :  { %v636_v6 = vadd.f32 %v2937_v36, %v635_v7 }
 0x1ac   :  { %v1126_v13 = vpop.f32.mrf.mxu3 }
 0x1ad   :  { %v767_v20 = vmax.f32 %v636_v6, 0.0  ;;  %v1127_v21 = vadd.f32 %v1126_v13, %v3082_v28 }
 0x1af   :  { %v1287_v26 = vmax.f32 %v1127_v21, 0.0  ;;  %v3088_v29 = vpack.c.bf16 %v767_v20, %v766_v9  ;;  %v356_v9 = vadd.f32 %v2728_v62, %v2800_v52  ;;  %v358_v21 = vadd.f32 %v2728_v62, %v2809_v58 }
 0x1b1   :  { %v1413_v33 = vpack.c.bf16 %v1287_v26, %v1285_v24  ;;  %1168 = vmatmul.bf16.gmra.mxu3 %v3088_v29  ;;  %v455_v41 = vmax.f32 %v356_v9, 0.0 }
 0x1b2   :  { %v638_v16 = vpop.f32.mrf.mxu1 }
 0x1b3   :  { %1785 = vmatmul.bf16.vlgmr.msrb.gmra.mxu1 %v1413_v33  ;;  %v639_v44 = vadd.f32 %v2937_v36, %v638_v16 }
 0x1b4   :  { %v1129_v35 = vpop.f32.mrf.mxu3 }
 0x1b5   :  { %677 = vmatmul.bf16.gmra.mxu2 %v497_v2  ;;  %v1130_v48 = vadd.f32 %v1129_v35, %v3082_v28  ;;  %v768_v57 = vmax.f32 %v639_v44, 0.0 }
 0x1b7   :  { %v1289_v1 = vmax.f32 %v1130_v48, 0.0 }
 0x1ba   :  { %v640_v47 = vpop.f32.mrf.mxu1 }
 0x1bb   :  { %v641_v43 = vadd.f32 %v2937_v36, %v640_v47 }
 0x1bc   :  { %v1131_v56 = vpop.f32.mrf.mxu3 }
 0x1bd   :  { %v769_v2 = vmax.f32 %v641_v43, 0.0  ;;  %v1132_v60 = vadd.f32 %v1131_v56, %v3082_v28  ;;  %v2184_v56 = vld [vmem:[%s3772_s5 + $0x40] sm:$0xf] }
 0x1bf   :  { %v1291_v22 = vmax.f32 %v1132_v60, 0.0  ;;  %v3101_v3 = vpack.c.bf16 %v769_v2, %v768_v57  ;;  %v2297_v57 = vld [vmem:[%s3772_s5 + $0x44] sm:$0xf0] }
 0x1c0   :  { %v2185_v2 = vor.u32 %v2297_v57, %v2184_v56 }
 0x1c1   :  { %1173 = vmatmul.bf16.gmra.mxu3 %v3101_v3  ;;  %v1415_v7 = vpack.c.bf16 %v1291_v22, %v1289_v1  ;;  %v361_v1 = vadd.f32 %v2728_v62, %v2820_v4 }
 0x1c2   :  { %v643_v5 = vpop.f32.mrf.mxu1  ;;  %949 = vmatpush.bf16.msrb.mxu2 %v2185_v2 }
 0x1c3   :  { %1790 = vmatmul.bf16.gmra.mxu1 %v1415_v7  ;;  %v644_v13 = vadd.f32 %v2937_v36, %v643_v5  ;;  %v363_v7 = vadd.f32 %v2728_v62, %v2829_v11 }
 0x1c4   :  { %v1134_v6 = vpop.f32.mrf.mxu3 }
 0x1c5   :  { %682 = vmatmul.bf16.gmra.mxu2 %v498_v50  ;;  %v1135_v24 = vadd.f32 %v1134_v6, %v3082_v28  ;;  %v770_v16 = vmax.f32 %v644_v13, 0.0  ;;  %v456_v50 = vmax.f32 %v358_v21, 0.0 }
 0x1c7   :  { %v1293_v42 = vmax.f32 %v1135_v24, 0.0  ;;  %v499_v58 = vpack.c.bf16 %v456_v50, %v455_v41  ;;  %v457_v24 = vmax.f32 %v361_v1, 0.0 }
 0x1ca   :  { %v645_v20 = vpop.f32.mrf.mxu1 }
 0x1cb   :  { %v646_v26 = vadd.f32 %v2937_v36, %v645_v20 }
 0x1cc   :  { %v1136_v33 = vpop.f32.mrf.mxu3 }
 0x1cd   :  { %v771_v35 = vmax.f32 %v646_v26, 0.0  ;;  %v1137_v38 = vadd.f32 %v1136_v33, %v3082_v28  ;;  %v458_v26 = vmax.f32 %v363_v7, 0.0 }
 0x1cf   :  { %v1295_v44 = vmax.f32 %v1137_v38, 0.0  ;;  %v3112_v47 = vpack.c.bf16 %v771_v35, %v770_v16  ;;  %v500_v11 = vpack.c.bf16 %v458_v26, %v457_v24 }
 0x1d1   :  { %1178 = vmatmul.bf16.gmra.mxu3 %v3112_v47  ;;  %v1417_v52 = vpack.c.bf16 %v1295_v44, %v1293_v42  ;;  %v366_v42 = vadd.f32 %v2728_v62, %v2846_v25 }
 0x1d2   :  { %v648_v48 = vpop.f32.mrf.mxu1 }
 0x1d3   :  { %1795 = vmatmul.bf16.gmra.mxu1 %v1417_v52  ;;  %v649_v60 = vadd.f32 %v2937_v36, %v648_v48  ;;  %v368_v52 = vadd.f32 %v2728_v62, %v2867_v39 }
 0x1d4   :  { %v1139_v43 = vpop.f32.mrf.mxu3 }
 0x1d5   :  { %687 = vmatmul.bf16.gmra.mxu2 %v499_v58  ;;  %v1140_v5 = vadd.f32 %v1139_v43, %v3082_v28  ;;  %v772_v9 = vmax.f32 %v649_v60, 0.0  ;;  %v459_v60 = vmax.f32 %v366_v42, 0.0  ;;  %v460_v1 = vmax.f32 %v368_v52, 0.0 }
 0x1d7   :  { %v1297_v33 = vmax.f32 %v1140_v5, 0.0  ;;  %v501_v39 = vpack.c.bf16 %v460_v1, %v459_v60  ;;  %v3167_v60 = vld [vmem:[%s3769_s2] ss:$0 sm:$0xff] }
 0x1d8   :  { %v376_v1 = vadd.f32 %v3167_v60, %v2927_v23 }
 0x1da   :  { %v650_v22 = vpop.f32.mrf.mxu1 }
 0x1db   :  { %v651_v6 = vadd.f32 %v2937_v36, %v650_v22 }
 0x1dc   :  { %v1141_v13 = vpop.f32.mrf.mxu3 }
 0x1dd   :  { %v773_v20 = vmax.f32 %v651_v6, 0.0  ;;  %v1142_v21 = vadd.f32 %v1141_v13, %v3082_v28 }
 0x1df   :  { %v1299_v16 = vmax.f32 %v1142_v21, 0.0  ;;  %v3129_v35 = vpack.c.bf16 %v773_v20, %v772_v9  ;;  %v2176_v9 = vld [vmem:[%s3772_s5 + $0x30] sm:$0xf]  ;;  %v2295_v20 = vld [vmem:[%s3772_s5 + $0x34] sm:$0xf0] }
 0x1e0   :  { %v2311_v21 = vld [vmem:[%s3773_s7 + $0x38] sm:$0xff]  ;;  %v2177_v24 = vor.u32 %v2295_v20, %v2176_v9 }
 0x1e1   :  { %1183 = vmatmul.bf16.gmra.mxu3 %v3129_v35  ;;  %v1419_v4 = vpack.c.bf16 %v1299_v16, %v1297_v33  ;;  %1608 = vmatpush.bf16.msrb.mxu0 %v2311_v21  ;;  %v371_v33 = vadd.f32 %v2728_v62, %v2902_v63  ;;  %v463_v21 = vmax.f32 %v376_v1, 0.0 }
 0x1e2   :  { %v653_v38 = vpop.f32.mrf.mxu1  ;;  %950 = vmatpush.bf16.msrb.mxu2 %v2177_v24 }
 0x1e3   :  { %1800 = vmatmul.bf16.gmra.mxu1 %v1419_v4  ;;  %v654_v50 = vadd.f32 %v2937_v36, %v653_v38  ;;  %v373_v4 = vadd.f32 %v2728_v62, %v2917_v10  ;;  %v461_v52 = vmax.f32 %v371_v33, 0.0 }
 0x1e4   :  { %v1144_v41 = vpop.f32.mrf.mxu3 }
 0x1e5   :  { %692 = vmatmul.bf16.gmra.mxu2 %v500_v11  ;;  %v1145_v48 = vadd.f32 %v1144_v41, %v3082_v28  ;;  %v774_v56 = vmax.f32 %v654_v50, 0.0 }
 0x1e7   :  { %v1301_v22 = vmax.f32 %v1145_v48, 0.0  ;;  %v462_v48 = vmax.f32 %v373_v4, 0.0 }
 0x1e9   :  { %v502_v62 = vpack.c.bf16 %v462_v48, %v461_v52  ;;  %v2310_v48 = vld [vmem:[%s3773_s7 + $0x30] sm:$0xff] }
 0x1ea   :  { %v655_v44 = vpop.f32.mrf.mxu1  ;;  %1609 = vmatpush.bf16.msrb.mxu0 %v2310_v48 }
 0x1eb   :  { %v656_v58 = vadd.f32 %v2937_v36, %v655_v44 }
 0x1ec   :  { %v1146_v43 = vpop.f32.mrf.mxu3 }
 0x1ed   :  { %v775_v57 = vmax.f32 %v656_v58, 0.0  ;;  %v1147_v2 = vadd.f32 %v1146_v43, %v3082_v28 }
 0x1ef   :  { %v1303_v7 = vmax.f32 %v1147_v2, 0.0  ;;  %v3140_v5 = vpack.c.bf16 %v775_v57, %v774_v56 }
 0x1f1   :  { %1188 = vmatmul.bf16.gmra.mxu3 %v3140_v5  ;;  %v1421_v25 = vpack.c.bf16 %v1303_v7, %v1301_v22  ;;  %v378_v7 = vadd.f32 %v3167_v60, %v2931_v30 }
 0x1f2   :  { %v658_v6 = vpop.f32.mrf.mxu1 }
 0x1f3   :  { %1805 = vmatmul.bf16.gmra.mxu1 %v1421_v25  ;;  %v659_v26 = vadd.f32 %v2937_v36, %v658_v6  ;;  %v464_v24 = vmax.f32 %v378_v7, 0.0 }
 0x1f4   :  { %v1149_v13 = vpop.f32.mrf.mxu3 }
 0x1f5   :  { %697 = vmatmul.bf16.gmra.mxu2 %v501_v39  ;;  %v1150_v38 = vadd.f32 %v1149_v13, %v3082_v28  ;;  %v776_v50 = vmax.f32 %v659_v26, 0.0  ;;  %v503_v30 = vpack.c.bf16 %v464_v24, %v463_v21 }
 0x1f7   :  { %v1305_v58 = vmax.f32 %v1150_v38, 0.0  ;;  %v2168_v38 = vld [vmem:[%s3772_s5 + $0x20] sm:$0xf] }
 0x1fa   :  { %v660_v16 = vpop.f32.mrf.mxu1 }
 0x1fb   :  { %v661_v11 = vadd.f32 %v2937_v36, %v660_v16 }
 0x1fc   :  { %v1151_v41 = vpop.f32.mrf.mxu3 }
 0x1fd   :  { %v777_v42 = vmax.f32 %v661_v11, 0.0  ;;  %v1152_v44 = vadd.f32 %v1151_v41, %v3082_v28  ;;  %v2293_v11 = vld [vmem:[%s3772_s5 + $0x24] sm:$0xf0] }
 0x1ff   :  { %v1307_v43 = vmax.f32 %v1152_v44, 0.0  ;;  %v3160_v56 = vpack.c.bf16 %v777_v42, %v776_v50  ;;  %v2169_v50 = vor.u32 %v2293_v11, %v2168_v38  ;;  %v381_v42 = vadd.f32 %v3167_v60, %v2939_v40 }
 0x200   :  { %v383_v44 = vadd.f32 %v3167_v60, %v2948_v55 }
 0x201   :  { %1193 = vmatmul.bf16.gmra.mxu3 %v3160_v56  ;;  %v1423_v63 = vpack.c.bf16 %v1307_v43, %v1305_v58  ;;  %951 = vmatpush.bf16.msrb.mxu2 %v2169_v50 }
 0x202   :  { %v663_v57 = vpop.f32.mrf.mxu1 }
 0x203   :  { %1810 = vmatmul.bf16.gmra.mxu1 %v1423_v63  ;;  %v664_v2 = vadd.f32 %v2937_v36, %v663_v57  ;;  %v465_v63 = vmax.f32 %v381_v42, 0.0  ;;  %v466_v57 = vmax.f32 %v383_v44, 0.0 }
 0x204   :  { %v1154_v10 = vpop.f32.mrf.mxu3 }
 0x205   :  { %702 = vmatmul.bf16.gmra.mxu2 %v502_v62  ;;  %v1155_v25 = vadd.f32 %v1154_v10, %v3082_v28  ;;  %v778_v13 = vmax.f32 %v664_v2, 0.0 }
 0x207   :  { %v1309_v26 = vmax.f32 %v1155_v25, 0.0  ;;  %v504_v25 = vpack.c.bf16 %v466_v57, %v465_v63 }
 0x20a   :  { %v665_v22 = vpop.f32.mrf.mxu1 }
 0x20b   :  { %v666_v6 = vadd.f32 %v2937_v36, %v665_v22 }
 0x20c   :  { %v1156_v39 = vpop.f32.mrf.mxu3 }
 0x20d   :  { %v779_v9 = vmax.f32 %v666_v6, 0.0  ;;  %v1157_v20 = vadd.f32 %v1156_v39, %v3082_v28 }
 0x20f   :  { %v1311_v33 = vmax.f32 %v1157_v20, 0.0  ;;  %v3176_v16 = vpack.c.bf16 %v779_v9, %v778_v13  ;;  %v386_v9 = vadd.f32 %v3167_v60, %v2952_v0  ;;  %v388_v20 = vadd.f32 %v3167_v60, %v2959_v17 }
 0x211   :  { %1198 = vmatmul.bf16.gmra.mxu3 %v3176_v16  ;;  %v1425_v23 = vpack.c.bf16 %v1311_v33, %v1309_v26  ;;  %v467_v33 = vmax.f32 %v386_v9, 0.0 }
 0x213   :  { %1815 = vmatmul.bf16.gmra.mxu1 %v1425_v23  ;;  %v468_v23 = vmax.f32 %v388_v20, 0.0 }
 0x214   :  { %v1159_v4 = vpop.f32.mrf.mxu3 }
 0x215   :  { %707 = vmatmul.bf16.gmra.mxu2 %v503_v30  ;;  %v1160_v52 = vadd.f32 %v1159_v4, %v3082_v28  ;;  %v505_v17 = vpack.c.bf16 %v468_v23, %v467_v33 }
 0x217   :  { %v1313_v62 = vmax.f32 %v1160_v52, 0.0 }
 0x218   :  { %v668_v41 = vpop.f32.mrf.mxu2 }
 0x219   :  { %v669_v10 = vadd.f32 %v2937_v36, %v668_v41 }
 0x21b   :  { %v780_v22 = vmax.f32 %v669_v10, 0.0  ;;  %v391_v10 = vadd.f32 %v3167_v60, %v2967_v32 }
 0x21c   :  { %v1161_v58 = vpop.f32.mrf.mxu3 }
 0x21d   :  { %v1162_v43 = vadd.f32 %v1161_v58, %v3082_v28  ;;  %v2160_v58 = vld [vmem:[%s3772_s5 + $0x10] sm:$0xf] }
 0x21f   :  { %v1315_v40 = vmax.f32 %v1162_v43, 0.0  ;;  %v2291_v43 = vld [vmem:[%s3772_s5 + $0x14] sm:$0xf0] }
 0x220   :  { %v670_v2 = vpop.f32.mrf.mxu2 }
 0x221   :  { %v671_v1 = vadd.f32 %v2937_v36, %v670_v2  ;;  %v1427_v55 = vpack.c.bf16 %v1315_v40, %v1313_v62  ;;  %v2161_v62 = vor.u32 %v2291_v43, %v2160_v58  ;;  %v393_v40 = vadd.f32 %v3167_v60, %v2971_v45 }
 0x223   :  { %v781_v7 = vmax.f32 %v671_v1, 0.0  ;;  %1820 = vmatmul.bf16.gmra.mxu1 %v1427_v55  ;;  %952 = vmatpush.bf16.msrb.mxu2 %v2161_v62  ;;  %v2309_v1 = vld [vmem:[%s3773_s7 + $0x28] sm:$0xff] }
 0x224   :  { %v1164_v6 = vpop.f32.mrf.mxu3  ;;  %1610 = vmatpush.bf16.msrb.mxu0 %v2309_v1 }
 0x225   :  { %712 = vmatmul.bf16.gmra.mxu2 %v504_v25  ;;  %v3196_v39 = vpack.c.bf16 %v781_v7, %v780_v22  ;;  %v1165_v21 = vadd.f32 %v1164_v6, %v3082_v28  ;;  %v469_v7 = vmax.f32 %v391_v10, 0.0  ;;  %v470_v25 = vmax.f32 %v393_v40, 0.0 }
 0x227   :  { %1203 = vmatmul.bf16.gmra.mxu3 %v3196_v39  ;;  %v1317_v30 = vmax.f32 %v1165_v21, 0.0  ;;  %v506_v33 = vpack.c.bf16 %v470_v25, %v469_v7  ;;  %v2152_v7 = vld [vmem:[%s3772_s5] sm:$0xf]  ;;  %v2289_v25 = vld [vmem:[%s3772_s5 + $0x4] sm:$0xf0] }
 0x228   :  { %v673_v13 = vpop.f32.mrf.mxu2 }
 0x229   :  { %v674_v4 = vadd.f32 %v2937_v36, %v673_v13 }
 0x22b   :  { %v782_v42 = vmax.f32 %v674_v4, 0.0 }
 0x22c   :  { %v1166_v24 = vpop.f32.mrf.mxu3 }
 0x22d   :  { %v1167_v26 = vadd.f32 %v1166_v24, %v3082_v28 }
 0x22f   :  { %v1319_v38 = vmax.f32 %v1167_v26, 0.0 }
 0x230   :  { %v675_v11 = vpop.f32.mrf.mxu2  ;;  %v3206_v41 = vpop.f32.mrf.mxu1 }
 0x231   :  { %v676_v50 = vadd.f32 %v2937_v36, %v675_v11  ;;  %v1429_v0 = vpack.c.bf16 %v1319_v38, %v1317_v30  ;;  %v396_v11 = vadd.f32 %v3167_v60, %v2979_v61 }
 0x233   :  { %v783_v44 = vmax.f32 %v676_v50, 0.0  ;;  %1825 = vmatmul.bf16.gmra.mxu1 %v1429_v0  ;;  %v398_v50 = vadd.f32 %v3167_v60, %v2984_v15 }
 0x234   :  { %v1169_v52 = vpop.f32.mrf.mxu3 }
 0x235   :  { %717 = vmatmul.bf16.gmra.mxu2 %v505_v17  ;;  %v3209_v48 = vpack.c.bf16 %v783_v44, %v782_v42  ;;  %v1170_v2 = vadd.f32 %v1169_v52, %v3082_v28  ;;  %v471_v17 = vmax.f32 %v396_v11, 0.0  ;;  %v472_v52 = vmax.f32 %v398_v50, 0.0 }
 0x237   :  { %1208 = vmatmul.bf16.gmra.mxu3 %v3209_v48  ;;  %v1321_v6 = vmax.f32 %v1170_v2, 0.0  ;;  %v507_v15 = vpack.c.bf16 %v472_v52, %v471_v17 }
 0x238   :  { %v678_v63 = vpop.f32.mrf.mxu2  ;;  %v3218_v57 = vpop.f32.mrf.mxu1 }
 0x239   :  { %v679_v13 = vadd.f32 %v2937_v36, %v678_v63 }
 0x23b   :  { %v784_v24 = vmax.f32 %v679_v13, 0.0 }
 0x23c   :  { %v1171_v55 = vpop.f32.mrf.mxu3 }
 0x23d   :  { %v1172_v22 = vadd.f32 %v1171_v55, %v3082_v28 }
 0x23f   :  { %v1323_v32 = vmax.f32 %v1172_v22, 0.0 }
 0x240   :  { %v680_v9 = vpop.f32.mrf.mxu2  ;;  %v3230_v20 = vpop.f32.mrf.mxu1 }
 0x241   :  { %v681_v45 = vadd.f32 %v2937_v36, %v680_v9  ;;  %v1431_v21 = vpack.c.bf16 %v1323_v32, %v1321_v6  ;;  %v2153_v32 = vor.u32 %v2289_v25, %v2152_v7  ;;  %v401_v9 = vadd.f32 %v3167_v60, %v2990_v27 }
 0x243   :  { %v785_v26 = vmax.f32 %v681_v45, 0.0  ;;  %1830 = vmatmul.bf16.gmra.mxu1 %v1431_v21  ;;  %953 = vmatpush.bf16.msrb.mxu2 %v2153_v32  ;;  %v403_v45 = vadd.f32 %v3167_v60, %v2999_v51 }
 0x244   :  { %v1174_v23 = vpop.f32.mrf.mxu3 }
 0x245   :  { %722 = vmatmul.bf16.gmra.mxu2 %v506_v33  ;;  %v3233_v30 = vpack.c.bf16 %v785_v26, %v784_v24  ;;  %v1175_v0 = vadd.f32 %v1174_v23, %v3082_v28  ;;  %v473_v33 = vmax.f32 %v401_v9, 0.0  ;;  %v474_v23 = vmax.f32 %v403_v45, 0.0 }
 0x247   :  { %1213 = vmatmul.bf16.gmra.mxu3 %v3233_v30  ;;  %v1325_v58 = vmax.f32 %v1175_v0, 0.0  ;;  %v2308_v0 = vld [vmem:[%s3773_s7 + $0x20] sm:$0xff] }
 0x248   :  { %v683_v4 = vpop.f32.mrf.mxu2  ;;  %v3236_v38 = vpop.f32.mrf.mxu1  ;;  %1611 = vmatpush.bf16.msrb.mxu0 %v2308_v0 }
 0x249   :  { %v684_v43 = vadd.f32 %v2937_v36, %v683_v4 }
 0x24b   :  { %v786_v2 = vmax.f32 %v684_v43, 0.0 }
 0x24c   :  { %v1176_v42 = vpop.f32.mrf.mxu3 }
 0x24d   :  { %v1177_v44 = vadd.f32 %v1176_v42, %v3082_v28 }
 0x24f   :  { %v1327_v63 = vmax.f32 %v1177_v44, 0.0 }
 0x250   :  { %v685_v62 = vpop.f32.mrf.mxu2  ;;  %v3245_v10 = vpop.f32.mrf.mxu1 }
 0x251   :  { %v686_v40 = vadd.f32 %v2937_v36, %v685_v62  ;;  %v1433_v61 = vpack.c.bf16 %v1327_v63, %v1325_v58  ;;  %v508_v58 = vpack.c.bf16 %v474_v23, %v473_v33 }
 0x253   :  { %v787_v1 = vmax.f32 %v686_v40, 0.0  ;;  %1835 = vmatmul.bf16.gmra.mxu1 %v1433_v61  ;;  %v406_v40 = vadd.f32 %v3167_v60, %v3024_v19  ;;  %v408_v61 = vadd.f32 %v3167_v60, %v3041_v53 }
 0x254   :  { %v1179_v55 = vpop.f32.mrf.mxu3 }
 0x255   :  { %727 = vmatmul.bf16.gmra.mxu2 %v507_v15  ;;  %v3248_v22 = vpack.c.bf16 %v787_v1, %v786_v2  ;;  %v1180_v21 = vadd.f32 %v1179_v55, %v3082_v28  ;;  %v475_v7 = vmax.f32 %v406_v40, 0.0  ;;  %v476_v25 = vmax.f32 %v408_v61, 0.0 }
 0x257   :  { %1218 = vmatmul.bf16.gmra.mxu3 %v3248_v22  ;;  %v1329_v4 = vmax.f32 %v1180_v21, 0.0  ;;  %v509_v53 = vpack.c.bf16 %v476_v25, %v475_v7 }
 0x258   :  { %v688_v6 = vpop.f32.mrf.mxu2  ;;  %v3257_v13 = vpop.f32.mrf.mxu1 }
 0x259   :  { %v689_v11 = vadd.f32 %v2937_v36, %v688_v6 }
 0x25b   :  { %v788_v17 = vmax.f32 %v689_v11, 0.0 }
 0x25c   :  { %v1181_v24 = vpop.f32.mrf.mxu3 }
 0x25d   :  { %v1182_v26 = vadd.f32 %v1181_v24, %v3082_v28 }
 0x25f   :  { %v1331_v50 = vmax.f32 %v1182_v26, 0.0 }
 0x260   :  { %v690_v27 = vpop.f32.mrf.mxu2  ;;  %v3270_v44 = vpop.f32.mrf.mxu1 }
 0x261   :  { %v691_v42 = vadd.f32 %v2937_v36, %v690_v27  ;;  %v1435_v51 = vpack.c.bf16 %v1331_v50, %v1329_v4  ;;  %v411_v50 = vadd.f32 %v3167_v60, %v3058_v14 }
 0x263   :  { %v789_v52 = vmax.f32 %v691_v42, 0.0  ;;  %1840 = vmatmul.bf16.gmra.mxu1 %v1435_v51  ;;  %v477_v51 = vmax.f32 %v411_v50, 0.0 }
 0x264   :  { %v1184_v43 = vpop.f32.mrf.mxu3 }
 0x265   :  { %732 = vmatmul.bf16.gmra.mxu2 %v508_v58  ;;  %v3272_v63 = vpack.c.bf16 %v789_v52, %v788_v17  ;;  %v1185_v2 = vadd.f32 %v1184_v43, %v3082_v28  ;;  %v3299_v58 = vld [vmem:[%s3771_s4] ss:$0 sm:$0xff] }
 0x267   :  { %1223 = vmatmul.bf16.gmra.mxu3 %v3272_v63  ;;  %v1333_v6 = vmax.f32 %v1185_v2, 0.0 }
 0x268   :  { %v693_v62 = vpop.f32.mrf.mxu2  ;;  %v3280_v1 = vpop.f32.mrf.mxu1 }
 0x269   :  { %v694_v32 = vadd.f32 %v2937_v36, %v693_v62 }
 0x26b   :  { %v790_v24 = vmax.f32 %v694_v32, 0.0 }
 0x26c   :  { %v1186_v15 = vpop.f32.mrf.mxu3 }
 0x26d   :  { %v1187_v55 = vadd.f32 %v1186_v15, %v3082_v28 }
 0x26f   :  { %v1335_v9 = vmax.f32 %v1187_v55, 0.0 }
 0x270   :  { %v695_v45 = vpop.f32.mrf.mxu2  ;;  %v3285_v23 = vpop.f32.mrf.mxu1 }
 0x271   :  { %v696_v21 = vadd.f32 %v2937_v36, %v695_v45  ;;  %v1437_v19 = vpack.c.bf16 %v1335_v9, %v1333_v6  ;;  %v413_v36 = vadd.f32 %v3167_v60, %v3072_v37  ;;  %v2307_v37 = vld [vmem:[%s3773_s7 + $0x18] sm:$0xff] }
 0x272   :  { %1612 = vmatpush.bf16.msrb.mxu0 %v2307_v37 }
 0x273   :  { %v791_v26 = vmax.f32 %v696_v21, 0.0  ;;  %1845 = vmatmul.bf16.gmra.mxu1 %v1437_v19  ;;  %v478_v17 = vmax.f32 %v413_v36, 0.0 }
 0x274   :  { %v1189_v33 = vpop.f32.mrf.mxu3 }
 0x275   :  { %737 = vmatmul.bf16.gmra.mxu2 %v509_v53  ;;  %v3287_v4 = vpack.c.bf16 %v791_v26, %v790_v24  ;;  %v1190_v0 = vadd.f32 %v1189_v33, %v3082_v28  ;;  %v510_v55 = vpack.c.bf16 %v478_v17, %v477_v51 }
 0x277   :  { %1228 = vmatmul.bf16.gmra.mxu3 %v3287_v4  ;;  %v1337_v52 = vmax.f32 %v1190_v0, 0.0 }
 0x278   :  { %v698_v11 = vpop.f32.mrf.mxu2  ;;  %v3302_v62 = vpop.f32.mrf.mxu1 }
 0x279   :  { %v699_v43 = vadd.f32 %v3299_v58, %v698_v11 }
 0x27b   :  { %v792_v2 = vmax.f32 %v699_v43, 0.0 }
 0x27c   :  { %v1191_v27 = vpop.f32.mrf.mxu3 }
 0x27d   :  { %v1192_v42 = vadd.f32 %v1191_v27, %v3082_v28 }
 0x27f   :  { %v1339_v14 = vmax.f32 %v1192_v42, 0.0 }
 0x280   :  { %v700_v60 = vpop.f32.mrf.mxu2  ;;  %v3311_v32 = vpop.f32.mrf.mxu1 }
 0x281   :  { %v701_v40 = vadd.f32 %v3299_v58, %v700_v60  ;;  %v1439_v61 = vpack.c.bf16 %v1339_v14, %v1337_v52 }
 0x283   :  { %v793_v15 = vmax.f32 %v701_v40, 0.0  ;;  %1850 = vmatmul.bf16.gmra.mxu1 %v1439_v61 }
 0x284   :  { %v1194_v7 = vpop.f32.mrf.mxu3 }
 0x285   :  { %742 = vmatmul.bf16.gmra.mxu2 %v510_v55  ;;  %v3308_v25 = vpack.c.bf16 %v793_v15, %v792_v2  ;;  %v1195_v9 = vadd.f32 %v1194_v7, %v3082_v28  ;;  %v2306_v7 = vld [vmem:[%s3773_s7 + $0x10] sm:$0xff] }
 0x286   :  { %1613 = vmatpush.bf16.msrb.mxu0 %v2306_v7 }
 0x287   :  { %1233 = vmatmul.bf16.gmra.mxu3 %v3308_v25  ;;  %v1341_v19 = vmax.f32 %v1195_v9, 0.0 }
 0x288   :  { %v703_v6 = vpop.f32.mrf.mxu2  ;;  %v3317_v36 = vpop.f32.mrf.mxu1 }
 0x289   :  { %v704_v24 = vadd.f32 %v3299_v58, %v703_v6 }
 0x28b   :  { %v794_v50 = vmax.f32 %v704_v24, 0.0 }
 0x28c   :  { %v1196_v45 = vpop.f32.mrf.mxu3 }
 0x28d   :  { %v1197_v21 = vadd.f32 %v1196_v45, %v3082_v28 }
 0x28f   :  { %v1343_v26 = vmax.f32 %v1197_v21, 0.0 }
 0x290   :  { %v705_v53 = vpop.f32.mrf.mxu2  ;;  %v3324_v43 = vpop.f32.mrf.mxu1 }
 0x291   :  { %v706_v33 = vadd.f32 %v3299_v58, %v705_v53  ;;  %v1441_v11 = vpack.c.bf16 %v1343_v26, %v1341_v19 }
 0x293   :  { %v795_v0 = vmax.f32 %v706_v33, 0.0  ;;  %1855 = vmatmul.bf16.gmra.mxu1 %v1441_v11 }
 0x294   :  { %v1199_v27 = vpop.f32.mrf.mxu3 }
 0x295   :  { %954 = vmatmul.bf16.vlgmr.msrb.gmra.mxu2 %v2944_v49  ;;  %v3320_v42 = vpack.c.bf16 %v795_v0, %v794_v50  ;;  %v1200_v17 = vadd.f32 %v1199_v27, %v3082_v28 }
 0x297   :  { %1238 = vmatmul.bf16.gmra.mxu3 %v3320_v42  ;;  %v1345_v37 = vmax.f32 %v1200_v17, 0.0 }
 0x298   :  { %v708_v51 = vpop.f32.mrf.mxu2  ;;  %v3335_v9 = vpop.f32.mrf.mxu1 }
 0x299   :  { %v709_v60 = vadd.f32 %v3299_v58, %v708_v51 }
 0x29b   :  { %v796_v15 = vmax.f32 %v709_v60, 0.0 }
 0x29c   :  { %v1201_v52 = vpop.f32.mrf.mxu3 }
 0x29d   :  { %v1202_v14 = vadd.f32 %v1201_v52, %v3082_v28 }
 0x29f   :  { %v1347_v40 = vmax.f32 %v1202_v14, 0.0 }
 0x2a0   :  { %v710_v61 = vpop.f32.mrf.mxu2  ;;  %v3339_v26 = vpop.f32.mrf.mxu1 }
 0x2a1   :  { %v711_v2 = vadd.f32 %v3299_v58, %v710_v61  ;;  %v1443_v49 = vpack.c.bf16 %v1347_v40, %v1345_v37 }
 0x2a3   :  { %v797_v55 = vmax.f32 %v711_v2, 0.0  ;;  %1860 = vmatmul.bf16.gmra.mxu1 %v1443_v49 }
 0x2a5   :  { %959 = vmatmul.bf16.gmra.mxu2 %v2956_v8  ;;  %v3333_v6 = vpack.c.bf16 %v797_v55, %v796_v15 }
 0x2a7   :  { %1243 = vmatmul.bf16.gmra.mxu3 %v3333_v6 }
 0x2a8   :  { %v713_v45 = vpop.f32.mrf.mxu2  ;;  %v3348_v60 = vpop.f32.mrf.mxu1 }
 0x2a9   :  { %v714_v19 = vadd.f32 %v3299_v58, %v713_v45 }
 0x2aa   :  { %v1204_v21 = vpop.f32.mrf.mxu3 }
 0x2ab   :  { %v1205_v53 = vadd.f32 %v1204_v21, %v3082_v28  ;;  %v798_v8 = vmax.f32 %v714_v19, 0.0 }
 0x2ad   :  { %v1349_v27 = vmax.f32 %v1205_v53, 0.0  ;;  %v2305_v53 = vld [vmem:[%s3773_s7 + $0x8] sm:$0xff] }
 0x2ae   :  { %1614 = vmatpush.bf16.msrb.mxu0 %v2305_v53 }
 0x2b0   :  { %v715_v24 = vpop.f32.mrf.mxu2  ;;  %v3354_v45 = vpop.f32.mrf.mxu1 }
 0x2b1   :  { %v716_v33 = vadd.f32 %v3299_v58, %v715_v24 }
 0x2b2   :  { %v1206_v11 = vpop.f32.mrf.mxu3 }
 0x2b3   :  { %v799_v50 = vmax.f32 %v716_v33, 0.0  ;;  %v1207_v0 = vadd.f32 %v1206_v11, %v3082_v28 }
 0x2b5   :  { %v1351_v51 = vmax.f32 %v1207_v0, 0.0  ;;  %964 = vmatmul.bf16.gmra.mxu2 %v2965_v31  ;;  %v3345_v17 = vpack.c.bf16 %v799_v50, %v798_v8 }
 0x2b7   :  { %1248 = vmatmul.bf16.gmra.mxu3 %v3345_v17  ;;  %v1445_v52 = vpack.c.bf16 %v1351_v51, %v1349_v27 }
 0x2b8   :  { %v718_v14 = vpop.f32.mrf.mxu2  ;;  %v3363_v50 = vpop.f32.mrf.mxu1 }
 0x2b9   :  { %1865 = vmatmul.bf16.gmra.mxu1 %v1445_v52  ;;  %v719_v40 = vadd.f32 %v3299_v58, %v718_v14 }
 0x2ba   :  { %v1209_v37 = vpop.f32.mrf.mxu3 }
 0x2bb   :  { %v1210_v2 = vadd.f32 %v1209_v37, %v3082_v28  ;;  %v800_v55 = vmax.f32 %v719_v40, 0.0 }
 0x2bd   :  { %v1353_v21 = vmax.f32 %v1210_v2, 0.0 }
 0x2c0   :  { %v720_v61 = vpop.f32.mrf.mxu2 }
 0x2c1   :  { %v721_v49 = vadd.f32 %v3299_v58, %v720_v61 }
 0x2c2   :  { %v1211_v15 = vpop.f32.mrf.mxu3 }
 0x2c3   :  { %v801_v31 = vmax.f32 %v721_v49, 0.0  ;;  %v1212_v7 = vadd.f32 %v1211_v15, %v3082_v28 }
 0x2c5   :  { %v1355_v19 = vmax.f32 %v1212_v7, 0.0  ;;  %969 = vmatmul.bf16.gmra.mxu2 %v2976_v54  ;;  %v3357_v24 = vpack.c.bf16 %v801_v31, %v800_v55  ;;  %v3373_v31 = vpop.f32.mrf.mxu1 }
 0x2c7   :  { %1253 = vmatmul.bf16.gmra.mxu3 %v3357_v24  ;;  %v1447_v33 = vpack.c.bf16 %v1355_v19, %v1353_v21 }
 0x2c8   :  { %v723_v11 = vpop.f32.mrf.mxu2 }
 0x2c9   :  { %1870 = vmatmul.bf16.gmra.mxu1 %v1447_v33  ;;  %v724_v0 = vadd.f32 %v3299_v58, %v723_v11 }
 0x2ca   :  { %v1214_v8 = vpop.f32.mrf.mxu3 }
 0x2cb   :  { %v1215_v54 = vadd.f32 %v1214_v8, %v3082_v28  ;;  %v802_v14 = vmax.f32 %v724_v0, 0.0 }
 0x2cd   :  { %v1357_v61 = vmax.f32 %v1215_v54, 0.0  ;;  %v3378_v8 = vpop.f32.mrf.mxu1 }
 0x2d0   :  { %v725_v27 = vpop.f32.mrf.mxu2 }
 0x2d1   :  { %v726_v51 = vadd.f32 %v3299_v58, %v725_v27 }
 0x2d2   :  { %v1216_v52 = vpop.f32.mrf.mxu3 }
 0x2d3   :  { %v803_v37 = vmax.f32 %v726_v51, 0.0  ;;  %v1217_v40 = vadd.f32 %v1216_v52, %v3082_v28 }
 0x2d5   :  { %v1359_v2 = vmax.f32 %v1217_v40, 0.0  ;;  %974 = vmatmul.bf16.gmra.mxu2 %v2987_v18  ;;  %v3370_v49 = vpack.c.bf16 %v803_v37, %v802_v14  ;;  %v2304_v37 = vld [vmem:[%s3773_s7] sm:$0xff] }
 0x2d6   :  { %1615 = vmatpush.bf16.msrb.mxu0 %v2304_v37 }
 0x2d7   :  { %1258 = vmatmul.bf16.gmra.mxu3 %v3370_v49  ;;  %v1449_v15 = vpack.c.bf16 %v1359_v2, %v1357_v61  ;;  %v3388_v2 = vpop.f32.mrf.mxu1 }
 0x2d8   :  { %v728_v55 = vpop.f32.mrf.mxu2 }
 0x2d9   :  { %1875 = vmatmul.bf16.gmra.mxu1 %v1449_v15  ;;  %v729_v21 = vadd.f32 %v3299_v58, %v728_v55 }
 0x2da   :  { %v1219_v7 = vpop.f32.mrf.mxu3 }
 0x2db   :  { %v1220_v53 = vadd.f32 %v1219_v7, %v3082_v28  ;;  %v804_v18 = vmax.f32 %v729_v21, 0.0 }
 0x2dd   :  { %v1361_v54 = vmax.f32 %v1220_v53, 0.0 }
 0x2e0   :  { %v730_v19 = vpop.f32.mrf.mxu2 }
 0x2e1   :  { %v731_v33 = vadd.f32 %v3299_v58, %v730_v19 }
 0x2e2   :  { %v1221_v11 = vpop.f32.mrf.mxu3 }
 0x2e3   :  { %v805_v0 = vmax.f32 %v731_v33, 0.0  ;;  %v1222_v27 = vadd.f32 %v1221_v11, %v3082_v28 }
 0x2e5   :  { %v1363_v51 = vmax.f32 %v1222_v27, 0.0  ;;  %979 = vmatmul.bf16.gmra.mxu2 %v2996_v46  ;;  %v3382_v52 = vpack.c.bf16 %v805_v0, %v804_v18  ;;  %v3397_v27 = vpop.f32.mrf.mxu1 }
 0x2e7   :  { %1263 = vmatmul.bf16.gmra.mxu3 %v3382_v52  ;;  %v1451_v14 = vpack.c.bf16 %v1363_v51, %v1361_v54 }
 0x2e8   :  { %v733_v40 = vpop.f32.mrf.mxu2 }
 0x2e9   :  { %1880 = vmatmul.bf16.gmra.mxu1 %v1451_v14  ;;  %v734_v15 = vadd.f32 %v3299_v58, %v733_v40 }
 0x2ea   :  { %v1224_v61 = vpop.f32.mrf.mxu3 }
 0x2eb   :  { %v1225_v46 = vadd.f32 %v1224_v61, %v3082_v28  ;;  %v806_v19 = vmax.f32 %v734_v15, 0.0 }
 0x2ed   :  { %v1365_v11 = vmax.f32 %v1225_v46, 0.0  ;;  %v3401_v61 = vpop.f32.mrf.mxu1 }
 0x2f0   :  { %v735_v55 = vpop.f32.mrf.mxu2 }
 0x2f1   :  { %v736_v7 = vadd.f32 %v3299_v58, %v735_v55 }
 0x2f2   :  { %v1226_v21 = vpop.f32.mrf.mxu3 }
 0x2f3   :  { %v807_v53 = vmax.f32 %v736_v7, 0.0  ;;  %v1227_v33 = vadd.f32 %v1226_v21, %v3082_v28 }
 0x2f5   :  { %v1367_v18 = vmax.f32 %v1227_v33, 0.0  ;;  %984 = vmatmul.bf16.gmra.mxu2 %v3031_v34  ;;  %v3395_v0 = vpack.c.bf16 %v807_v53, %v806_v19 }
 0x2f7   :  { %v1453_v54 = vpack.c.bf16 %v1367_v18, %v1365_v11  ;;  %1268 = vmatmul.bf16.gmra.mxu3 %v3395_v0 }
 0x2f8   :  { %v738_v51 = vpop.f32.mrf.mxu2 }
 0x2f9   :  { %1885 = vmatmul.bf16.gmra.mxu1 %v1453_v54  ;;  %v739_v37 = vadd.f32 %v3299_v58, %v738_v51  ;;  %v3410_v51 = vpop.f32.mrf.mxu1 }
 0x2fa   :  { %v1229_v14 = vpop.f32.mrf.mxu3 }
 0x2fb   :  { %v1230_v15 = vadd.f32 %v1229_v14, %v3082_v28  ;;  %v808_v46 = vmax.f32 %v739_v37, 0.0 }
 0x2fd   :  { %v1369_v19 = vmax.f32 %v1230_v15, 0.0 }
 0x300   :  { %v740_v40 = vpop.f32.mrf.mxu2 }
 0x301   :  { %v741_v55 = vadd.f32 %v3299_v58, %v740_v40 }
 0x302   :  { %v1231_v34 = vpop.f32.mrf.mxu3 }
 0x303   :  { %v809_v7 = vmax.f32 %v741_v55, 0.0  ;;  %v1232_v21 = vadd.f32 %v1231_v34, %v3082_v28 }
 0x305   :  { %v1371_v53 = vmax.f32 %v1232_v21, 0.0  ;;  %989 = vmatmul.bf16.gmra.mxu2 %v3056_v12  ;;  %v3407_v33 = vpack.c.bf16 %v809_v7, %v808_v46  ;;  %v3416_v7 = vpop.f32.mrf.mxu1 }
 0x307   :  { %3779 = vst [vmem:[#allocation2_spill] sm:$0xff] %v3407_v33  ;;  %v1455_v11 = vpack.c.bf16 %v1371_v53, %v1369_v19  ;;  %1273 = vmatmul.bf16.gmra.mxu3 %v3407_v33 }
 0x308   :  { %v743_v18 = vpop.f32.mrf.mxu2 }
 0x309   :  { %1890 = vmatmul.bf16.gmra.mxu1 %v1455_v11  ;;  %v744_v14 = vadd.f32 %v3299_v58, %v743_v18 }
 0x30a   :  { %v1234_v54 = vpop.f32.mrf.mxu3 }
 0x30b   :  { %v1235_v40 = vadd.f32 %v1234_v54, %v3082_v28  ;;  %v810_v34 = vmax.f32 %v744_v14, 0.0 }
 0x30d   :  { %v1373_v21 = vmax.f32 %v1235_v40, 0.0 }
 0x310   :  { %v745_v37 = vpop.f32.mrf.mxu2 }
 0x311   :  { %v746_v15 = vadd.f32 %v3299_v58, %v745_v37  ;;  %v2526_v58 = vld [vmem:[%s3774_s6] sm:$0x3]  ;;  %v3427_v37 = vpop.f32.mrf.mxu1 }
 0x312   :  { %v1236_v55 = vpop.f32.mrf.mxu3  ;;  %v3425_v14 = vperm.slane %v2526_v58, 0  ;;  %3781 = vst [vmem:[#allocation4_spill] sm:$0xff] %v3427_v37 }
 0x313   :  { %v811_v12 = vmax.f32 %v746_v15, 0.0  ;;  %v1237_v46 = vadd.f32 %v1236_v55, %v3082_v28 }
 0x315   :  { %v1375_v19 = vmax.f32 %v1237_v46, 0.0  ;;  %994 = vmatmul.bf16.gmra.mxu2 %v3075_v59  ;;  %v3419_v53 = vpack.c.bf16 %v811_v12, %v810_v34 }
 0x317   :  { %3780 = vst [vmem:[#allocation3_spill] sm:$0xff] %v3419_v53  ;;  %v1457_v11 = vpack.c.bf16 %v1375_v19, %v1373_v21  ;;  %1278 = vmatmul.bf16.gmra.mxu3 %v3419_v53 }
 0x318   :  { %v955_v18 = vpop.f32.mrf.mxu2 }
 0x319   :  { %1895 = vmatmul.bf16.gmra.mxu1 %v1457_v11  ;;  %v956_v40 = vadd.f32 %v955_v18, %v3425_v14  ;;  %v3434_v37 = vpop.f32.mrf.mxu1 }
 0x31a   :  { %v1239_v54 = vpop.f32.mrf.mxu3  ;;  %3782 = vst [vmem:[#allocation5_spill] sm:$0xff] %v3434_v37 }
 0x31b   :  { %v1240_v59 = vadd.f32 %v1239_v54, %v3082_v28  ;;  %v1284_v12 = vmax.f32 %v956_v40, 0.0 }
 0x31d   :  { %v1377_v19 = vmax.f32 %v1240_v59, 0.0 }
 0x320   :  { %v957_v15 = vpop.f32.mrf.mxu2 }
 0x321   :  { %v958_v55 = vadd.f32 %v957_v15, %v3425_v14  ;;  %v3439_v59 = vpop.f32.mrf.mxu1 }
 0x322   :  { %v1241_v34 = vpop.f32.mrf.mxu3 }
 0x323   :  { %v1286_v46 = vmax.f32 %v958_v55, 0.0  ;;  %v1242_v21 = vadd.f32 %v1241_v34, %v3082_v28 }
 0x325   :  { %v1412_v11 = vpack.c.bf16 %v1286_v46, %v1284_v12  ;;  %v1379_v53 = vmax.f32 %v1242_v21, 0.0  ;;  %999 = vmatmul.bf16.gmra.mxu2 %v3088_v29 }
 0x327   :  { %v1459_v58 = vpack.c.bf16 %v1379_v53, %v1377_v19  ;;  %1616 = vmatmul.bf16.vlgmr.msrb.gmra.mxu0 %v1412_v11 }
 0x328   :  { %v960_v33 = vpop.f32.mrf.mxu2 }
 0x329   :  { %1900 = vmatmul.bf16.gmra.mxu1 %v1459_v58  ;;  %v961_v54 = vadd.f32 %v960_v33, %v3425_v14 }
 0x32a   :  { %v1244_v18 = vpop.f32.mrf.mxu3 }
 0x32b   :  { %v1245_v40 = vadd.f32 %v1244_v18, %v3082_v28  ;;  %v1288_v12 = vmax.f32 %v961_v54, 0.0  ;;  %v3443_v18 = vpop.f32.mrf.mxu1 }
 0x32c   :  { %3783 = vst [vmem:[#allocation6_spill] sm:$0xff] %v3443_v18 }
 0x32d   :  { %v1381_v53 = vmax.f32 %v1245_v40, 0.0 }
 0x330   :  { %v962_v15 = vpop.f32.mrf.mxu2 }
 0x331   :  { %v963_v55 = vadd.f32 %v962_v15, %v3425_v14 }
 0x332   :  { %v1246_v34 = vpop.f32.mrf.mxu3 }
 0x333   :  { %v1290_v46 = vmax.f32 %v963_v55, 0.0  ;;  %v1247_v29 = vadd.f32 %v1246_v34, %v3082_v28 }
 0x335   :  { %v1383_v21 = vmax.f32 %v1247_v29, 0.0  ;;  %1004 = vmatmul.bf16.gmra.mxu2 %v3101_v3  ;;  %v1414_v19 = vpack.c.bf16 %v1290_v46, %v1288_v12 }
 0x337   :  { %v1461_v11 = vpack.c.bf16 %v1383_v21, %v1381_v53  ;;  %1621 = vmatmul.bf16.gmra.mxu0 %v1414_v19  ;;  %v3450_v21 = vpop.f32.mrf.mxu1 }
 0x338   :  { %v965_v33 = vpop.f32.mrf.mxu2 }
 0x339   :  { %1905 = vmatmul.bf16.gmra.mxu1 %v1461_v11  ;;  %v966_v15 = vadd.f32 %v965_v33, %v3425_v14 }
 0x33a   :  { %v1249_v58 = vpop.f32.mrf.mxu3 }
 0x33b   :  { %v1250_v54 = vadd.f32 %v1249_v58, %v3082_v28  ;;  %v1292_v40 = vmax.f32 %v966_v15, 0.0 }
 0x33d   :  { %v1385_v12 = vmax.f32 %v1250_v54, 0.0 }
 0x33f   :  { %v3453_v18 = vpop.f32.mrf.mxu1 }
 0x340   :  { %v967_v37 = vpop.f32.mrf.mxu2 }
 0x341   :  { %v968_v55 = vadd.f32 %v967_v37, %v3425_v14 }
 0x342   :  { %v1251_v34 = vpop.f32.mrf.mxu3 }
 0x343   :  { %v1294_v29 = vmax.f32 %v968_v55, 0.0  ;;  %v1252_v3 = vadd.f32 %v1251_v34, %v3082_v28 }
 0x345   :  { %v1387_v46 = vmax.f32 %v1252_v3, 0.0  ;;  %1009 = vmatmul.bf16.gmra.mxu2 %v3112_v47  ;;  %v1416_v53 = vpack.c.bf16 %v1294_v29, %v1292_v40 }
 0x347   :  { %v1463_v19 = vpack.c.bf16 %v1387_v46, %v1385_v12  ;;  %1626 = vmatmul.bf16.gmra.mxu0 %v1416_v53 }
 0x348   :  { %v970_v11 = vpop.f32.mrf.mxu2 }
 0x349   :  { %1910 = vmatmul.bf16.gmra.mxu1 %v1463_v19  ;;  %v971_v58 = vadd.f32 %v970_v11, %v3425_v14  ;;  %v3459_v11 = vpop.f32.mrf.mxu1 }
 0x34a   :  { %v1254_v33 = vpop.f32.mrf.mxu3  ;;  %3784 = vst [vmem:[#allocation7_spill] sm:$0xff] %v3459_v11 }
 0x34b   :  { %v1255_v15 = vadd.f32 %v1254_v33, %v3082_v28  ;;  %v1296_v34 = vmax.f32 %v971_v58, 0.0 }
 0x34d   :  { %v1389_v29 = vmax.f32 %v1255_v15, 0.0 }
 0x350   :  { %v972_v37 = vpop.f32.mrf.mxu2 }
 0x351   :  { %v973_v54 = vadd.f32 %v972_v37, %v3425_v14  ;;  %v3464_v15 = vpop.f32.mrf.mxu1 }
 0x352   :  { %v1256_v55 = vpop.f32.mrf.mxu3 }
 0x353   :  { %v1298_v47 = vmax.f32 %v973_v54, 0.0  ;;  %v1257_v40 = vadd.f32 %v1256_v55, %v3082_v28 }
 0x355   :  { %v1391_v3 = vmax.f32 %v1257_v40, 0.0  ;;  %1014 = vmatmul.bf16.gmra.mxu2 %v3129_v35  ;;  %v1418_v12 = vpack.c.bf16 %v1298_v47, %v1296_v34 }
 0x357   :  { %v1465_v46 = vpack.c.bf16 %v1391_v3, %v1389_v29  ;;  %1631 = vmatmul.bf16.gmra.mxu0 %v1418_v12 }
 0x358   :  { %v975_v53 = vpop.f32.mrf.mxu2 }
 0x359   :  { %1915 = vmatmul.bf16.gmra.mxu1 %v1465_v46  ;;  %v976_v33 = vadd.f32 %v975_v53, %v3425_v14 }
 0x35a   :  { %v1259_v19 = vpop.f32.mrf.mxu3 }
 0x35b   :  { %v1260_v58 = vadd.f32 %v1259_v19, %v3082_v28  ;;  %v1300_v40 = vmax.f32 %v976_v33, 0.0  ;;  %v3468_v19 = vpop.f32.mrf.mxu1 }
 0x35c   :  { %3785 = vst [vmem:[#allocation8_spill] sm:$0xff] %v3468_v19 }
 0x35d   :  { %v1393_v47 = vmax.f32 %v1260_v58, 0.0 }
 0x360   :  { %v977_v37 = vpop.f32.mrf.mxu2 }
 0x361   :  { %v978_v54 = vadd.f32 %v977_v37, %v3425_v14 }
 0x362   :  { %v1261_v55 = vpop.f32.mrf.mxu3 }
 0x363   :  { %v1302_v35 = vmax.f32 %v978_v54, 0.0  ;;  %v1262_v34 = vadd.f32 %v1261_v55, %v3082_v28 }
 0x365   :  { %v1395_v29 = vmax.f32 %v1262_v34, 0.0  ;;  %1019 = vmatmul.bf16.gmra.mxu2 %v3140_v5  ;;  %v1420_v3 = vpack.c.bf16 %v1302_v35, %v1300_v40 }
 0x367   :  { %v1467_v12 = vpack.c.bf16 %v1395_v29, %v1393_v47  ;;  %1636 = vmatmul.bf16.gmra.mxu0 %v1420_v3  ;;  %v3475_v29 = vpop.f32.mrf.mxu1 }
 0x368   :  { %v980_v46 = vpop.f32.mrf.mxu2 }
 0x369   :  { %1920 = vmatmul.bf16.gmra.mxu1 %v1467_v12  ;;  %v981_v37 = vadd.f32 %v980_v46, %v3425_v14 }
 0x36a   :  { %v1264_v53 = vpop.f32.mrf.mxu3 }
 0x36b   :  { %v1265_v33 = vadd.f32 %v1264_v53, %v3082_v28  ;;  %v1304_v58 = vmax.f32 %v981_v37, 0.0 }
 0x36d   :  { %v1397_v40 = vmax.f32 %v1265_v33, 0.0 }
 0x36f   :  { %v3478_v19 = vpop.f32.mrf.mxu1 }
 0x370   :  { %v982_v11 = vpop.f32.mrf.mxu2 }
 0x371   :  { %v983_v54 = vadd.f32 %v982_v11, %v3425_v14 }
 0x372   :  { %v1266_v55 = vpop.f32.mrf.mxu3 }
 0x373   :  { %v1306_v34 = vmax.f32 %v983_v54, 0.0  ;;  %v1267_v5 = vadd.f32 %v1266_v55, %v3082_v28 }
 0x375   :  { %v1399_v35 = vmax.f32 %v1267_v5, 0.0  ;;  %1024 = vmatmul.bf16.gmra.mxu2 %v3160_v56  ;;  %v1422_v47 = vpack.c.bf16 %v1306_v34, %v1304_v58 }
 0x377   :  { %v1469_v3 = vpack.c.bf16 %v1399_v35, %v1397_v40  ;;  %1641 = vmatmul.bf16.gmra.mxu0 %v1422_v47 }
 0x378   :  { %v985_v12 = vpop.f32.mrf.mxu2 }
 0x379   :  { %1925 = vmatmul.bf16.gmra.mxu1 %v1469_v3  ;;  %v986_v53 = vadd.f32 %v985_v12, %v3425_v14  ;;  %v3484_v12 = vpop.f32.mrf.mxu1 }
 0x37a   :  { %v1269_v46 = vpop.f32.mrf.mxu3 }
 0x37b   :  { %v1270_v37 = vadd.f32 %v1269_v46, %v3082_v28  ;;  %v1308_v55 = vmax.f32 %v986_v53, 0.0 }
 0x37d   :  { %v1401_v34 = vmax.f32 %v1270_v37, 0.0 }
 0x380   :  { %v987_v11 = vpop.f32.mrf.mxu2 }
 0x381   :  { %v988_v33 = vadd.f32 %v987_v11, %v3425_v14 }
 0x382   :  { %v1271_v54 = vpop.f32.mrf.mxu3 }
 0x383   :  { %v1310_v56 = vmax.f32 %v988_v33, 0.0  ;;  %v1272_v58 = vadd.f32 %v1271_v54, %v3082_v28 }
 0x385   :  { %v1403_v5 = vmax.f32 %v1272_v58, 0.0  ;;  %1029 = vmatmul.bf16.gmra.mxu2 %v3176_v16  ;;  %v1424_v40 = vpack.c.bf16 %v1310_v56, %v1308_v55  ;;  %v3490_v55 = vpop.f32.mrf.mxu1 }
 0x386   :  { %3786 = vst [vmem:[#allocation9_spill] sm:$0xff] %v3490_v55 }
 0x387   :  { %v1471_v35 = vpack.c.bf16 %v1403_v5, %v1401_v34  ;;  %1646 = vmatmul.bf16.gmra.mxu0 %v1424_v40 }
 0x388   :  { %v990_v47 = vpop.f32.mrf.mxu2 }
 0x389   :  { %1930 = vmatmul.bf16.gmra.mxu1 %v1471_v35  ;;  %v991_v46 = vadd.f32 %v990_v47, %v3425_v14 }
 0x38a   :  { %v1274_v3 = vpop.f32.mrf.mxu3 }
 0x38b   :  { %v1275_v53 = vadd.f32 %v1274_v3, %v3082_v28  ;;  %v1312_v37 = vmax.f32 %v991_v46, 0.0 }
 0x38d   :  { %v1405_v56 = vmax.f32 %v1275_v53, 0.0  ;;  %v3493_v3 = vpop.f32.mrf.mxu1 }
 0x390   :  { %v992_v11 = vpop.f32.mrf.mxu2 }
 0x391   :  { %v993_v33 = vadd.f32 %v992_v11, %v3425_v14 }
 0x392   :  { %v1276_v54 = vpop.f32.mrf.mxu3 }
 0x393   :  { %v1314_v58 = vmax.f32 %v993_v33, 0.0  ;;  %v1277_v16 = vadd.f32 %v1276_v54, %v3082_v28 }
 0x395   :  { %v1407_v34 = vmax.f32 %v1277_v16, 0.0  ;;  %1034 = vmatmul.bf16.gmra.mxu2 %v3196_v39  ;;  %v1426_v5 = vpack.c.bf16 %v1314_v58, %v1312_v37 }
 0x397   :  { %v1473_v40 = vpack.c.bf16 %v1407_v34, %v1405_v56  ;;  %1651 = vmatmul.bf16.gmra.mxu0 %v1426_v5 }
 0x398   :  { %v995_v35 = vpop.f32.mrf.mxu2 }
 0x399   :  { %1935 = vmatmul.bf16.gmra.mxu1 %v1473_v40  ;;  %v996_v11 = vadd.f32 %v995_v35, %v3425_v14  ;;  %v3503_v40 = vld [vmem:[%s3775_s8] ss:$0 sm:$0xff] }
 0x39a   :  { %v1279_v47 = vpop.f32.mrf.mxu3 }
 0x39b   :  { %v1280_v33 = vadd.f32 %v1279_v47, %v3082_v28  ;;  %v1316_v53 = vmax.f32 %v996_v11, 0.0  ;;  %v3505_v47 = vpop.f32.mrf.mxu1 }
 0x39d   :  { %v1409_v58 = vmax.f32 %v1280_v33, 0.0 }
 0x3a0   :  { %v997_v46 = vpop.f32.mrf.mxu2 }
 0x3a1   :  { %v998_v54 = vadd.f32 %v997_v46, %v3425_v14 }
 0x3a2   :  { %v1281_v55 = vpop.f32.mrf.mxu3 }
 0x3a3   :  { %v1318_v16 = vmax.f32 %v998_v54, 0.0  ;;  %v1282_v39 = vadd.f32 %v1281_v55, %v3082_v28 }
 0x3a4   :  { %v1617_v37 = vpop.f32.mrf.mxu0 }
 0x3a5   :  { %v1411_v56 = vmax.f32 %v1282_v39, 0.0  ;;  %1039 = vmatmul.bf16.gmra.mxu2 %v3209_v48  ;;  %v1428_v34 = vpack.c.bf16 %v1318_v16, %v1316_v53  ;;  %v1618_v11 = vadd.f32 %v3503_v40, %v1617_v37 }
 0x3a7   :  { %v1475_v5 = vpack.c.bf16 %v1411_v56, %v1409_v58  ;;  %1656 = vmatmul.bf16.gmra.mxu0 %v1428_v34  ;;  %v1787_v46 = vadd.f32 %v3206_v41, %v1618_v11 }
 0x3a8   :  { %v1000_v35 = vpop.f32.mrf.mxu2 }
 0x3a9   :  { %1940 = vmatmul.bf16.gmra.mxu1 %v1475_v5  ;;  %v1001_v48 = vadd.f32 %v1000_v35, %v3425_v14 }
 0x3ab   :  { %v1320_v39 = vmax.f32 %v1001_v48, 0.0 }
 0x3ac   :  { %v1619_v28 = vpop.f32.mrf.mxu0 }
 0x3ad   :  { %v1620_v55 = vadd.f32 %v3503_v40, %v1619_v28 }
 0x3af   :  { %v1789_v33 = vadd.f32 %v3218_v57, %v1620_v55 }
 0x3b0   :  { %v1002_v54 = vpop.f32.mrf.mxu2 }
 0x3b1   :  { %v2323_v53 = vpack.c.bf16 %v1789_v33, %v1787_v46  ;;  %v1003_v16 = vadd.f32 %v1002_v54, %v3425_v14 }
 0x3b3   :  { %2324 = vst [vmem:[%s3776_s9] sm:$0xff] %v2323_v53   ;;  %v1322_v58 = vmax.f32 %v1003_v16, 0.0 }
 0x3b4   :  { %v1622_v37 = vpop.f32.mrf.mxu0 }
 0x3b5   :  { %1044 = vmatmul.bf16.gmra.mxu2 %v3233_v30  ;;  %v1430_v56 = vpack.c.bf16 %v1322_v58, %v1320_v39  ;;  %v1623_v34 = vadd.f32 %v3503_v40, %v1622_v37 }
 0x3b7   :  { %1661 = vmatmul.bf16.gmra.mxu0 %v1430_v56  ;;  %v1792_v35 = vadd.f32 %v3230_v20, %v1623_v34 }
 0x3b8   :  { %v1005_v41 = vpop.f32.mrf.mxu2 }
 0x3b9   :  { %v1006_v11 = vadd.f32 %v1005_v41, %v3425_v14 }
 0x3bb   :  { %v1324_v33 = vmax.f32 %v1006_v11, 0.0 }
 0x3bc   :  { %v1624_v5 = vpop.f32.mrf.mxu0 }
 0x3bd   :  { %v1625_v57 = vadd.f32 %v3503_v40, %v1624_v5 }
 0x3bf   :  { %v1794_v28 = vadd.f32 %v3236_v38, %v1625_v57 }
 0x3c0   :  { %v1007_v55 = vpop.f32.mrf.mxu2 }
 0x3c1   :  { %v2328_v46 = vpack.c.bf16 %v1794_v28, %v1792_v35  ;;  %v1008_v48 = vadd.f32 %v1007_v55, %v3425_v14 }
 0x3c3   :  { %2480 = vst [vmem:[%s3776_s9 + $0x8] sm:$0xff] %v2328_v46   ;;  %v1326_v30 = vmax.f32 %v1008_v48, 0.0 }
 0x3c4   :  { %v1627_v54 = vpop.f32.mrf.mxu0 }
 0x3c5   :  { %1049 = vmatmul.bf16.gmra.mxu2 %v3248_v22  ;;  %v1432_v53 = vpack.c.bf16 %v1326_v30, %v1324_v33  ;;  %v1628_v16 = vadd.f32 %v3503_v40, %v1627_v54 }
 0x3c7   :  { %1666 = vmatmul.bf16.gmra.mxu0 %v1432_v53  ;;  %v1797_v58 = vadd.f32 %v3245_v10, %v1628_v16 }
 0x3c8   :  { %v1010_v20 = vpop.f32.mrf.mxu2 }
 0x3c9   :  { %v1011_v37 = vadd.f32 %v1010_v20, %v3425_v14 }
 0x3cb   :  { %v1328_v57 = vmax.f32 %v1011_v37, 0.0 }
 0x3cc   :  { %v1629_v39 = vpop.f32.mrf.mxu0 }
 0x3cd   :  { %v1630_v38 = vadd.f32 %v3503_v40, %v1629_v39 }
 0x3cf   :  { %v1799_v56 = vadd.f32 %v3257_v13, %v1630_v38 }
 0x3d0   :  { %v1012_v41 = vpop.f32.mrf.mxu2 }
 0x3d1   :  { %v2333_v34 = vpack.c.bf16 %v1799_v56, %v1797_v58  ;;  %v1013_v5 = vadd.f32 %v1012_v41, %v3425_v14 }
 0x3d3   :  { %2481 = vst [vmem:[%s3776_s9 + $0x10] sm:$0xff] %v2333_v34   ;;  %v1330_v22 = vmax.f32 %v1013_v5, 0.0 }
 0x3d4   :  { %v1632_v35 = vpop.f32.mrf.mxu0 }
 0x3d5   :  { %1054 = vmatmul.bf16.gmra.mxu2 %v3272_v63  ;;  %v1434_v11 = vpack.c.bf16 %v1330_v22, %v1328_v57  ;;  %v1633_v28 = vadd.f32 %v3503_v40, %v1632_v35 }
 0x3d7   :  { %1671 = vmatmul.bf16.gmra.mxu0 %v1434_v11  ;;  %v1802_v46 = vadd.f32 %v3270_v44, %v1633_v28 }
 0x3d8   :  { %v1015_v10 = vpop.f32.mrf.mxu2 }
 0x3d9   :  { %v1016_v48 = vadd.f32 %v1015_v10, %v3425_v14 }
 0x3db   :  { %v1332_v20 = vmax.f32 %v1016_v48, 0.0 }
 0x3dc   :  { %v1634_v55 = vpop.f32.mrf.mxu0 }
 0x3dd   :  { %v1635_v13 = vadd.f32 %v3503_v40, %v1634_v55 }
 0x3df   :  { %v1804_v33 = vadd.f32 %v3280_v1, %v1635_v13 }
 0x3e0   :  { %v1017_v30 = vpop.f32.mrf.mxu2 }
 0x3e1   :  { %v2338_v54 = vpack.c.bf16 %v1804_v33, %v1802_v46  ;;  %v1018_v53 = vadd.f32 %v1017_v30, %v3425_v14 }
 0x3e3   :  { %2482 = vst [vmem:[%s3776_s9 + $0x18] sm:$0xff] %v2338_v54   ;;  %v1334_v63 = vmax.f32 %v1018_v53, 0.0 }
 0x3e4   :  { %v1637_v16 = vpop.f32.mrf.mxu0 }
 0x3e5   :  { %1059 = vmatmul.bf16.gmra.mxu2 %v3287_v4  ;;  %v1436_v39 = vpack.c.bf16 %v1334_v63, %v1332_v20  ;;  %v1638_v38 = vadd.f32 %v3503_v40, %v1637_v16 }
 0x3e7   :  { %1676 = vmatmul.bf16.gmra.mxu0 %v1436_v39  ;;  %v1807_v37 = vadd.f32 %v3285_v23, %v1638_v38 }
 0x3e8   :  { %v1020_v44 = vpop.f32.mrf.mxu2 }
 0x3e9   :  { %v1021_v56 = vadd.f32 %v1020_v44, %v3425_v14 }
 0x3eb   :  { %v1336_v22 = vmax.f32 %v1021_v56, 0.0 }
 0x3ec   :  { %v1639_v58 = vpop.f32.mrf.mxu0 }
 0x3ed   :  { %v1640_v1 = vadd.f32 %v3503_v40, %v1639_v58 }
 0x3ef   :  { %v1809_v41 = vadd.f32 %v3302_v62, %v1640_v1 }
 0x3f0   :  { %v1022_v34 = vpop.f32.mrf.mxu2 }
 0x3f1   :  { %v2343_v5 = vpack.c.bf16 %v1809_v41, %v1807_v37  ;;  %v1023_v57 = vadd.f32 %v1022_v34, %v3425_v14 }
 0x3f3   :  { %2483 = vst [vmem:[%s3776_s9 + $0x20] sm:$0xff] %v2343_v5   ;;  %v1338_v4 = vmax.f32 %v1023_v57, 0.0 }
 0x3f4   :  { %v1642_v35 = vpop.f32.mrf.mxu0 }
 0x3f5   :  { %1064 = vmatmul.bf16.gmra.mxu2 %v3308_v25  ;;  %v1438_v11 = vpack.c.bf16 %v1338_v4, %v1336_v22  ;;  %v1643_v10 = vadd.f32 %v3503_v40, %v1642_v35 }
 0x3f7   :  { %1681 = vmatmul.bf16.gmra.mxu0 %v1438_v11  ;;  %v1812_v55 = vadd.f32 %v3311_v32, %v1643_v10 }
 0x3f8   :  { %v1025_v23 = vpop.f32.mrf.mxu2 }
 0x3f9   :  { %v1026_v13 = vadd.f32 %v1025_v23, %v3425_v14 }
 0x3fb   :  { %v1340_v54 = vmax.f32 %v1026_v13, 0.0 }
 0x3fc   :  { %v1644_v28 = vpop.f32.mrf.mxu0 }
 0x3fd   :  { %v1645_v62 = vadd.f32 %v3503_v40, %v1644_v28 }
 0x3ff   :  { %v1814_v46 = vadd.f32 %v3317_v36, %v1645_v62 }
 0x400   :  { %v1027_v48 = vpop.f32.mrf.mxu2 }
 0x401   :  { %v2348_v33 = vpack.c.bf16 %v1814_v46, %v1812_v55  ;;  %v1028_v30 = vadd.f32 %v1027_v48, %v3425_v14 }
 0x403   :  { %2484 = vst [vmem:[%s3776_s9 + $0x28] sm:$0xff] %v2348_v33   ;;  %v1342_v25 = vmax.f32 %v1028_v30, 0.0 }
 0x404   :  { %v1647_v53 = vpop.f32.mrf.mxu0 }
 0x405   :  { %1069 = vmatmul.bf16.gmra.mxu2 %v3320_v42  ;;  %v1440_v20 = vpack.c.bf16 %v1342_v25, %v1340_v54  ;;  %v1648_v63 = vadd.f32 %v3503_v40, %v1647_v53 }
 0x407   :  { %1686 = vmatmul.bf16.gmra.mxu0 %v1440_v20  ;;  %v1817_v39 = vadd.f32 %v3324_v43, %v1648_v63 }
 0x408   :  { %v1030_v32 = vpop.f32.mrf.mxu2 }
 0x409   :  { %v1031_v44 = vadd.f32 %v1030_v32, %v3425_v14 }
 0x40b   :  { %v1344_v56 = vmax.f32 %v1031_v44, 0.0 }
 0x40c   :  { %v1649_v16 = vpop.f32.mrf.mxu0 }
 0x40d   :  { %v1650_v36 = vadd.f32 %v3503_v40, %v1649_v16 }
 0x40f   :  { %v1819_v38 = vadd.f32 %v3335_v9, %v1650_v36 }
 0x410   :  { %v1032_v58 = vpop.f32.mrf.mxu2 }
 0x411   :  { %v2353_v1 = vpack.c.bf16 %v1819_v38, %v1817_v39  ;;  %v1033_v37 = vadd.f32 %v1032_v58, %v3425_v14 }
 0x413   :  { %2485 = vst [vmem:[%s3776_s9 + $0x30] sm:$0xff] %v2353_v1   ;;  %v1346_v42 = vmax.f32 %v1033_v37, 0.0 }
 0x414   :  { %v1652_v41 = vpop.f32.mrf.mxu0 }
 0x415   :  { %1074 = vmatmul.bf16.gmra.mxu2 %v3333_v6  ;;  %v1442_v34 = vpack.c.bf16 %v1346_v42, %v1344_v56  ;;  %v1653_v5 = vadd.f32 %v3503_v40, %v1652_v41 }
 0x417   :  { %1691 = vmatmul.bf16.gmra.mxu0 %v1442_v34  ;;  %v1822_v22 = vadd.f32 %v3339_v26, %v1653_v5 }
 0x418   :  { %v1035_v43 = vpop.f32.mrf.mxu2 }
 0x419   :  { %v1036_v4 = vadd.f32 %v1035_v43, %v3425_v14 }
 0x41b   :  { %v1348_v28 = vmax.f32 %v1036_v4, 0.0 }
 0x41c   :  { %v1654_v57 = vpop.f32.mrf.mxu0 }
 0x41d   :  { %v1655_v9 = vadd.f32 %v3503_v40, %v1654_v57 }
 0x41f   :  { %v1824_v35 = vadd.f32 %v3348_v60, %v1655_v9 }
 0x420   :  { %v1037_v11 = vpop.f32.mrf.mxu2 }
 0x421   :  { %v2358_v23 = vpack.c.bf16 %v1824_v35, %v1822_v22  ;;  %v1038_v10 = vadd.f32 %v1037_v11, %v3425_v14 }
 0x423   :  { %2486 = vst [vmem:[%s3776_s9 + $0x38] sm:$0xff] %v2358_v23   ;;  %v1350_v6 = vmax.f32 %v1038_v10, 0.0 }
 0x424   :  { %v1657_v62 = vpop.f32.mrf.mxu0 }
 0x425   :  { %1079 = vmatmul.bf16.gmra.mxu2 %v3345_v17  ;;  %v1444_v55 = vpack.c.bf16 %v1350_v6, %v1348_v28  ;;  %v1658_v13 = vadd.f32 %v3503_v40, %v1657_v62 }
 0x427   :  { %1696 = vmatmul.bf16.gmra.mxu0 %v1444_v55  ;;  %v1827_v48 = vadd.f32 %v3354_v45, %v1658_v13 }
 0x428   :  { %v1040_v26 = vpop.f32.mrf.mxu2 }
 0x429   :  { %v1041_v33 = vadd.f32 %v1040_v26, %v3425_v14 }
 0x42b   :  { %v1352_v20 = vmax.f32 %v1041_v33, 0.0 }
 0x42c   :  { %v1659_v46 = vpop.f32.mrf.mxu0 }
 0x42d   :  { %v1660_v60 = vadd.f32 %v3503_v40, %v1659_v46 }
 0x42f   :  { %v1829_v30 = vadd.f32 %v3363_v50, %v1660_v60 }
 0x430   :  { %v1042_v54 = vpop.f32.mrf.mxu2 }
 0x431   :  { %v2363_v25 = vpack.c.bf16 %v1829_v30, %v1827_v48  ;;  %v1043_v53 = vadd.f32 %v1042_v54, %v3425_v14 }
 0x433   :  { %2487 = vst [vmem:[%s3776_s9 + $0x40] sm:$0xff] %v2363_v25   ;;  %v1354_v17 = vmax.f32 %v1043_v53, 0.0 }
 0x434   :  { %v1662_v32 = vpop.f32.mrf.mxu0 }
 0x435   :  { %1084 = vmatmul.bf16.gmra.mxu2 %v3357_v24  ;;  %v1446_v63 = vpack.c.bf16 %v1354_v17, %v1352_v20  ;;  %v1663_v16 = vadd.f32 %v3503_v40, %v1662_v32  ;;  %v3787_v17 = vld [vmem:[#allocation4_spill] sm:$0xff] }
 0x437   :  { %1701 = vmatmul.bf16.gmra.mxu0 %v1446_v63  ;;  %v1832_v39 = vadd.f32 %v3373_v31, %v1663_v16 }
 0x438   :  { %v1045_v45 = vpop.f32.mrf.mxu2 }
 0x439   :  { %v1046_v44 = vadd.f32 %v1045_v45, %v3425_v14 }
 0x43b   :  { %v1356_v56 = vmax.f32 %v1046_v44, 0.0  ;;  %v3788_v44 = vld [vmem:[#allocation2_spill] sm:$0xff] }
 0x43c   :  { %v1664_v36 = vpop.f32.mrf.mxu0 }
 0x43d   :  { %v1665_v50 = vadd.f32 %v3503_v40, %v1664_v36 }
 0x43f   :  { %v1834_v38 = vadd.f32 %v3378_v8, %v1665_v50 }
 0x440   :  { %v1047_v58 = vpop.f32.mrf.mxu2 }
 0x441   :  { %v2368_v1 = vpack.c.bf16 %v1834_v38, %v1832_v39  ;;  %v1048_v37 = vadd.f32 %v1047_v58, %v3425_v14 }
 0x443   :  { %2488 = vst [vmem:[%s3776_s9 + $0x48] sm:$0xff] %v2368_v1   ;;  %v1358_v24 = vmax.f32 %v1048_v37, 0.0  ;;  %v3789_v37 = vld [vmem:[#allocation5_spill] sm:$0xff] }
 0x444   :  { %v1667_v42 = vpop.f32.mrf.mxu0 }
 0x445   :  { %1089 = vmatmul.bf16.gmra.mxu2 %v3370_v49  ;;  %v1448_v41 = vpack.c.bf16 %v1358_v24, %v1356_v56  ;;  %v1668_v34 = vadd.f32 %v3503_v40, %v1667_v42 }
 0x447   :  { %1706 = vmatmul.bf16.gmra.mxu0 %v1448_v41  ;;  %v1837_v5 = vadd.f32 %v3388_v2, %v1668_v34 }
 0x448   :  { %v1050_v31 = vpop.f32.mrf.mxu2 }
 0x449   :  { %v1051_v57 = vadd.f32 %v1050_v31, %v3425_v14 }
 0x44b   :  { %v1360_v11 = vmax.f32 %v1051_v57, 0.0 }
 0x44c   :  { %v1669_v43 = vpop.f32.mrf.mxu0 }
 0x44d   :  { %v1670_v8 = vadd.f32 %v3503_v40, %v1669_v43 }
 0x44f   :  { %v1839_v9 = vadd.f32 %v3397_v27, %v1670_v8 }
 0x450   :  { %v1052_v22 = vpop.f32.mrf.mxu2 }
 0x451   :  { %v2373_v4 = vpack.c.bf16 %v1839_v9, %v1837_v5  ;;  %v1053_v35 = vadd.f32 %v1052_v22, %v3425_v14  ;;  %v3790_v9 = vld [vmem:[#allocation3_spill] sm:$0xff] }
 0x453   :  { %2489 = vst [vmem:[%s3776_s9 + $0x50] sm:$0xff] %v2373_v4   ;;  %v1362_v49 = vmax.f32 %v1053_v35, 0.0 }
 0x454   :  { %v1672_v23 = vpop.f32.mrf.mxu0 }
 0x455   :  { %1094 = vmatmul.bf16.gmra.mxu2 %v3382_v52  ;;  %v1450_v10 = vpack.c.bf16 %v1362_v49, %v1360_v11  ;;  %v1673_v28 = vadd.f32 %v3503_v40, %v1672_v23  ;;  %v3791_v11 = vld [vmem:[#allocation6_spill] sm:$0xff] }
 0x457   :  { %1711 = vmatmul.bf16.gmra.mxu0 %v1450_v10  ;;  %v1842_v62 = vadd.f32 %v3401_v61, %v1673_v28 }
 0x458   :  { %v1055_v2 = vpop.f32.mrf.mxu2 }
 0x459   :  { %v1056_v55 = vadd.f32 %v1055_v2, %v3425_v14 }
 0x45b   :  { %v1364_v48 = vmax.f32 %v1056_v55, 0.0 }
 0x45c   :  { %v1674_v6 = vpop.f32.mrf.mxu0 }
 0x45d   :  { %v1675_v27 = vadd.f32 %v3503_v40, %v1674_v6 }
 0x45f   :  { %v1844_v26 = vadd.f32 %v3410_v51, %v1675_v27 }
 0x460   :  { %v1057_v13 = vpop.f32.mrf.mxu2 }
 0x461   :  { %v2378_v46 = vpack.c.bf16 %v1844_v26, %v1842_v62  ;;  %v1058_v60 = vadd.f32 %v1057_v13, %v3425_v14 }
 0x463   :  { %2490 = vst [vmem:[%s3776_s9 + $0x58] sm:$0xff] %v2378_v46   ;;  %v1366_v52 = vmax.f32 %v1058_v60, 0.0 }
 0x464   :  { %v1677_v33 = vpop.f32.mrf.mxu0 }
 0x465   :  { %v1452_v30 = vpack.c.bf16 %v1366_v52, %v1364_v48  ;;  %1099 = vmatmul.bf16.gmra.mxu2 %v3395_v0  ;;  %v1678_v54 = vadd.f32 %v3503_v40, %v1677_v33  ;;  %v3792_v33 = vld [vmem:[#allocation7_spill] sm:$0xff] }
 0x467   :  { %1716 = vmatmul.bf16.gmra.mxu0 %v1452_v30  ;;  %v1847_v53 = vadd.f32 %v3416_v7, %v1678_v54 }
 0x468   :  { %v1060_v61 = vpop.f32.mrf.mxu2 }
 0x469   :  { %v1061_v20 = vadd.f32 %v1060_v61, %v3425_v14 }
 0x46b   :  { %v1368_v36 = vmax.f32 %v1061_v20, 0.0 }
 0x46c   :  { %v1679_v25 = vpop.f32.mrf.mxu0 }
 0x46d   :  { %v1680_v51 = vadd.f32 %v3503_v40, %v1679_v25 }
 0x46f   :  { %v1849_v32 = vadd.f32 %v3787_v17, %v1680_v51 }
 0x470   :  { %v1062_v63 = vpop.f32.mrf.mxu2 }
 0x471   :  { %v2383_v45 = vpack.c.bf16 %v1849_v32, %v1847_v53  ;;  %v1063_v16 = vadd.f32 %v1062_v63, %v3425_v14 }
 0x473   :  { %2491 = vst [vmem:[%s3776_s9 + $0x60] sm:$0xff] %v2383_v45   ;;  %v1370_v0 = vmax.f32 %v1063_v16, 0.0 }
 0x474   :  { %v1682_v50 = vpop.f32.mrf.mxu0 }
 0x475   :  { %v1454_v39 = vpack.c.bf16 %v1370_v0, %v1368_v36  ;;  %1104 = vmatmul.bf16.gmra.mxu2 %v3788_v44  ;;  %v1683_v38 = vadd.f32 %v3503_v40, %v1682_v50  ;;  %v3793_v0 = vld [vmem:[#allocation8_spill] sm:$0xff] }
 0x477   :  { %1721 = vmatmul.bf16.gmra.mxu0 %v1454_v39  ;;  %v1852_v56 = vadd.f32 %v3789_v37, %v1683_v38 }
 0x478   :  { %v1065_v7 = vpop.f32.mrf.mxu2 }
 0x479   :  { %v1066_v24 = vadd.f32 %v1065_v7, %v3425_v14 }
 0x47b   :  { %v1372_v43 = vmax.f32 %v1066_v24, 0.0 }
 0x47c   :  { %v1684_v58 = vpop.f32.mrf.mxu0 }
 0x47d   :  { %v1685_v1 = vadd.f32 %v3503_v40, %v1684_v58 }
 0x47f   :  { %v1854_v42 = vadd.f32 %v3439_v59, %v1685_v1 }
 0x480   :  { %v1067_v41 = vpop.f32.mrf.mxu2 }
 0x481   :  { %v2388_v31 = vpack.c.bf16 %v1854_v42, %v1852_v56  ;;  %v1068_v34 = vadd.f32 %v1067_v41, %v3425_v14  ;;  %v1886_v56 = vpop.f32.mrf.mxu1 }
 0x483   :  { %2492 = vst [vmem:[%s3776_s9 + $0x68] sm:$0xff] %v2388_v31   ;;  %v1374_v8 = vmax.f32 %v1068_v34, 0.0 }
 0x484   :  { %v1687_v5 = vpop.f32.mrf.mxu0 }
 0x485   :  { %v1456_v57 = vpack.c.bf16 %v1374_v8, %v1372_v43  ;;  %1109 = vmatmul.bf16.gmra.mxu2 %v3790_v9  ;;  %v1688_v4 = vadd.f32 %v3503_v40, %v1687_v5 }
 0x487   :  { %1726 = vmatmul.bf16.gmra.mxu0 %v1456_v57  ;;  %v1857_v49 = vadd.f32 %v3791_v11, %v1688_v4 }
 0x488   :  { %v1070_v22 = vpop.f32.mrf.mxu2 }
 0x489   :  { %v1071_v23 = vadd.f32 %v1070_v22, %v3425_v14  ;;  %v1888_v9 = vpop.f32.mrf.mxu1 }
 0x48b   :  { %v1376_v27 = vmax.f32 %v1071_v23, 0.0 }
 0x48c   :  { %v1689_v35 = vpop.f32.mrf.mxu0 }
 0x48d   :  { %v1690_v59 = vadd.f32 %v3503_v40, %v1689_v35 }
 0x48f   :  { %v1859_v10 = vadd.f32 %v3450_v21, %v1690_v59 }
 0x490   :  { %v1072_v2 = vpop.f32.mrf.mxu2 }
 0x491   :  { %v2393_v28 = vpack.c.bf16 %v1859_v10, %v1857_v49  ;;  %v1073_v6 = vadd.f32 %v1072_v2, %v3425_v14  ;;  %v1891_v49 = vpop.f32.mrf.mxu1 }
 0x493   :  { %2493 = vst [vmem:[%s3776_s9 + $0x70] sm:$0xff] %v2393_v28   ;;  %v1378_v62 = vmax.f32 %v1073_v6, 0.0  ;;  %v3794_v28 = vld [vmem:[#allocation9_spill] sm:$0xff] }
 0x494   :  { %v1692_v55 = vpop.f32.mrf.mxu0 }
 0x495   :  { %v1458_v26 = vpack.c.bf16 %v1378_v62, %v1376_v27  ;;  %v1693_v46 = vadd.f32 %v3503_v40, %v1692_v55 }
 0x497   :  { %1731 = vmatmul.bf16.gmra.mxu0 %v1458_v26  ;;  %v1862_v21 = vadd.f32 %v3453_v18, %v1693_v46 }
 0x498   :  { %v1075_v13 = vpop.f32.mrf.mxu2 }
 0x499   :  { %v1076_v52 = vadd.f32 %v1075_v13, %v3425_v14 }
 0x49b   :  { %v1380_v51 = vmax.f32 %v1076_v52, 0.0 }
 0x49c   :  { %v1694_v60 = vpop.f32.mrf.mxu0 }
 0x49d   :  { %v1695_v48 = vadd.f32 %v3503_v40, %v1694_v60 }
 0x49f   :  { %v1864_v30 = vadd.f32 %v3792_v33, %v1695_v48  ;;  %v1893_v48 = vpop.f32.mrf.mxu1 }
 0x4a0   :  { %v1077_v61 = vpop.f32.mrf.mxu2 }
 0x4a1   :  { %v2398_v54 = vpack.c.bf16 %v1864_v30, %v1862_v21  ;;  %v1078_v25 = vadd.f32 %v1077_v61, %v3425_v14 }
 0x4a3   :  { %2494 = vst [vmem:[%s3776_s9 + $0x78] sm:$0xff] %v2398_v54   ;;  %v1382_v53 = vmax.f32 %v1078_v25, 0.0 }
 0x4a4   :  { %v1697_v20 = vpop.f32.mrf.mxu0 }
 0x4a5   :  { %v1460_v17 = vpack.c.bf16 %v1382_v53, %v1380_v51  ;;  %v1698_v18 = vadd.f32 %v3503_v40, %v1697_v20 }
 0x4a7   :  { %1736 = vmatmul.bf16.gmra.mxu0 %v1460_v17  ;;  %v1867_v16 = vadd.f32 %v3464_v15, %v1698_v18  ;;  %v1896_v25 = vpop.f32.mrf.mxu1 }
 0x4a8   :  { %v1080_v32 = vpop.f32.mrf.mxu2 }
 0x4a9   :  { %v1081_v36 = vadd.f32 %v1080_v32, %v3425_v14 }
 0x4ab   :  { %v1384_v38 = vmax.f32 %v1081_v36, 0.0 }
 0x4ac   :  { %v1699_v63 = vpop.f32.mrf.mxu0 }
 0x4ad   :  { %v1700_v45 = vadd.f32 %v3503_v40, %v1699_v63 }
 0x4af   :  { %v1869_v50 = vadd.f32 %v3793_v0, %v1700_v45 }
 0x4b0   :  { %v1082_v39 = vpop.f32.mrf.mxu2 }
 0x4b1   :  { %v2403_v44 = vpack.c.bf16 %v1869_v50, %v1867_v16  ;;  %v1083_v7 = vadd.f32 %v1082_v39, %v3425_v14 }
 0x4b3   :  { %2495 = vst [vmem:[%s3776_s9 + $0x80] sm:$0xff] %v2403_v44   ;;  %v1386_v58 = vmax.f32 %v1083_v7, 0.0 }
 0x4b4   :  { %v1702_v1 = vpop.f32.mrf.mxu0 }
 0x4b5   :  { %v1462_v37 = vpack.c.bf16 %v1386_v58, %v1384_v38  ;;  %v1703_v15 = vadd.f32 %v3503_v40, %v1702_v1 }
 0x4b7   :  { %1741 = vmatmul.bf16.gmra.mxu0 %v1462_v37  ;;  %v1872_v31 = vadd.f32 %v3475_v29, %v1703_v15 }
 0x4b8   :  { %v1085_v24 = vpop.f32.mrf.mxu2 }
 0x4b9   :  { %v1086_v34 = vadd.f32 %v1085_v24, %v3425_v14 }
 0x4bb   :  { %v1388_v22 = vmax.f32 %v1086_v34, 0.0 }
 0x4bc   :  { %v1704_v42 = vpop.f32.mrf.mxu0 }
 0x4bd   :  { %v1705_v41 = vadd.f32 %v3503_v40, %v1704_v42 }
 0x4bf   :  { %v1874_v43 = vadd.f32 %v3478_v19, %v1705_v41 }
 0x4c0   :  { %v1087_v8 = vpop.f32.mrf.mxu2 }
 0x4c1   :  { %v2408_v5 = vpack.c.bf16 %v1874_v43, %v1872_v31  ;;  %v1088_v57 = vadd.f32 %v1087_v8, %v3425_v14 }
 0x4c3   :  { %2496 = vst [vmem:[%s3776_s9 + $0x88] sm:$0xff] %v2408_v5   ;;  %v1390_v4 = vmax.f32 %v1088_v57, 0.0 }
 0x4c4   :  { %v1707_v35 = vpop.f32.mrf.mxu0 }
 0x4c5   :  { %v1464_v59 = vpack.c.bf16 %v1390_v4, %v1388_v22  ;;  %v1708_v29 = vadd.f32 %v3503_v40, %v1707_v35 }
 0x4c7   :  { %1746 = vmatmul.bf16.gmra.mxu0 %v1464_v59  ;;  %v1877_v10 = vadd.f32 %v3484_v12, %v1708_v29 }
 0x4c8   :  { %v1090_v11 = vpop.f32.mrf.mxu2 }
 0x4c9   :  { %v1091_v2 = vadd.f32 %v1090_v11, %v3425_v14 }
 0x4cb   :  { %v1392_v26 = vmax.f32 %v1091_v2, 0.0 }
 0x4cc   :  { %v1709_v23 = vpop.f32.mrf.mxu0 }
 0x4cd   :  { %v1710_v19 = vadd.f32 %v3503_v40, %v1709_v23 }
 0x4cf   :  { %v1879_v6 = vadd.f32 %v3794_v28, %v1710_v19 }
 0x4d0   :  { %v1092_v27 = vpop.f32.mrf.mxu2 }
 0x4d1   :  { %v2413_v62 = vpack.c.bf16 %v1879_v6, %v1877_v10  ;;  %v1093_v55 = vadd.f32 %v1092_v27, %v3425_v14 }
 0x4d3   :  { %2497 = vst [vmem:[%s3776_s9 + $0x90] sm:$0xff] %v2413_v62   ;;  %v1394_v13 = vmax.f32 %v1093_v55, 0.0 }
 0x4d4   :  { %v1712_v46 = vpop.f32.mrf.mxu0 }
 0x4d5   :  { %v1466_v60 = vpack.c.bf16 %v1394_v13, %v1392_v26  ;;  %v1713_v12 = vadd.f32 %v3503_v40, %v1712_v46 }
 0x4d7   :  { %1751 = vmatmul.bf16.gmra.mxu0 %v1466_v60  ;;  %v1882_v30 = vadd.f32 %v3493_v3, %v1713_v12  ;;  %v1898_v3 = vpop.f32.mrf.mxu1 }
 0x4d8   :  { %v1095_v21 = vpop.f32.mrf.mxu2 }
 0x4d9   :  { %v1096_v61 = vadd.f32 %v1095_v21, %v3425_v14 }
 0x4db   :  { %v1396_v17 = vmax.f32 %v1096_v61, 0.0 }
 0x4dc   :  { %v1714_v52 = vpop.f32.mrf.mxu0 }
 0x4dd   :  { %v1715_v33 = vadd.f32 %v3503_v40, %v1714_v52 }
 0x4df   :  { %v1884_v54 = vadd.f32 %v3505_v47, %v1715_v33  ;;  %v1901_v37 = vpop.f32.mrf.mxu1 }
 0x4e0   :  { %v1097_v51 = vpop.f32.mrf.mxu2 }
 0x4e1   :  { %v2418_v53 = vpack.c.bf16 %v1884_v54, %v1882_v30  ;;  %v1098_v20 = vadd.f32 %v1097_v51, %v3425_v14 }
 0x4e3   :  { %2498 = vst [vmem:[%s3776_s9 + $0x98] sm:$0xff] %v2418_v53   ;;  %v1398_v32 = vmax.f32 %v1098_v20, 0.0 }
 0x4e4   :  { %v1717_v18 = vpop.f32.mrf.mxu0 }
 0x4e5   :  { %v1468_v63 = vpack.c.bf16 %v1398_v32, %v1396_v17  ;;  %v1718_v16 = vadd.f32 %v3503_v40, %v1717_v18 }
 0x4e7   :  { %1756 = vmatmul.bf16.gmra.mxu0 %v1468_v63  ;;  %v1887_v0 = vadd.f32 %v1886_v56, %v1718_v16  ;;  %v1903_v34 = vpop.f32.mrf.mxu1 }
 0x4e8   :  { %v1100_v45 = vpop.f32.mrf.mxu2 }
 0x4e9   :  { %v1101_v50 = vadd.f32 %v1100_v45, %v3425_v14 }
 0x4eb   :  { %v1400_v58 = vmax.f32 %v1101_v50, 0.0 }
 0x4ec   :  { %v1719_v36 = vpop.f32.mrf.mxu0 }
 0x4ed   :  { %v1720_v47 = vadd.f32 %v3503_v40, %v1719_v36 }
 0x4ef   :  { %v1889_v39 = vadd.f32 %v1888_v9, %v1720_v47  ;;  %v1906_v29 = vpop.f32.mrf.mxu1 }
 0x4f0   :  { %v1102_v44 = vpop.f32.mrf.mxu2 }
 0x4f1   :  { %v2423_v7 = vpack.c.bf16 %v1889_v39, %v1887_v0  ;;  %v1103_v38 = vadd.f32 %v1102_v44, %v3425_v14 }
 0x4f3   :  { %2499 = vst [vmem:[%s3776_s9 + $0xa0] sm:$0xff] %v2423_v7   ;;  %v1402_v1 = vmax.f32 %v1103_v38, 0.0 }
 0x4f4   :  { %v1722_v24 = vpop.f32.mrf.mxu0 }
 0x4f5   :  { %v1470_v15 = vpack.c.bf16 %v1402_v1, %v1400_v58  ;;  %v1723_v56 = vadd.f32 %v3503_v40, %v1722_v24 }
 0x4f7   :  { %1761 = vmatmul.bf16.gmra.mxu0 %v1470_v15  ;;  %v1892_v43 = vadd.f32 %v1891_v49, %v1723_v56  ;;  %v1908_v26 = vpop.f32.mrf.mxu1 }
 0x4f8   :  { %v1105_v42 = vpop.f32.mrf.mxu2 }
 0x4f9   :  { %v1106_v8 = vadd.f32 %v1105_v42, %v3425_v14 }
 0x4fb   :  { %v1404_v4 = vmax.f32 %v1106_v8, 0.0 }
 0x4fc   :  { %v1724_v41 = vpop.f32.mrf.mxu0 }
 0x4fd   :  { %v1725_v31 = vadd.f32 %v3503_v40, %v1724_v41 }
 0x4ff   :  { %v1894_v5 = vadd.f32 %v1893_v48, %v1725_v31  ;;  %v1911_v12 = vpop.f32.mrf.mxu1 }
 0x500   :  { %v1107_v57 = vpop.f32.mrf.mxu2 }
 0x501   :  { %v2428_v9 = vpack.c.bf16 %v1894_v5, %v1892_v43  ;;  %v1108_v22 = vadd.f32 %v1107_v57, %v3425_v14 }
 0x503   :  { %2500 = vst [vmem:[%s3776_s9 + $0xa8] sm:$0xff] %v2428_v9   ;;  %v1406_v35 = vmax.f32 %v1108_v22, 0.0 }
 0x504   :  { %v1727_v59 = vpop.f32.mrf.mxu0 }
 0x505   :  { %v1472_v11 = vpack.c.bf16 %v1406_v35, %v1404_v4  ;;  %v1728_v49 = vadd.f32 %v3503_v40, %v1727_v59 }
 0x507   :  { %1766 = vmatmul.bf16.gmra.mxu0 %v1472_v11  ;;  %v1897_v2 = vadd.f32 %v1896_v25, %v1728_v49  ;;  %v1913_v25 = vpop.f32.mrf.mxu1 }
 0x508   :  { %v1110_v23 = vpop.f32.mrf.mxu2 }
 0x509   :  { %v1111_v28 = vadd.f32 %v1110_v23, %v3425_v14 }
 0x50b   :  { %v1408_v13 = vmax.f32 %v1111_v28, 0.0 }
 0x50c   :  { %v1729_v19 = vpop.f32.mrf.mxu0 }
 0x50d   :  { %v1730_v10 = vadd.f32 %v3503_v40, %v1729_v19 }
 0x50f   :  { %v1899_v6 = vadd.f32 %v1898_v3, %v1730_v10  ;;  %v1916_v18 = vpop.f32.mrf.mxu1 }
 0x510   :  { %v1112_v27 = vpop.f32.mrf.mxu2 }
 0x511   :  { %v2433_v62 = vpack.c.bf16 %v1899_v6, %v1897_v2  ;;  %v1113_v55 = vadd.f32 %v1112_v27, %v3425_v14 }
 0x513   :  { %2501 = vst [vmem:[%s3776_s9 + $0xb0] sm:$0xff] %v2433_v62   ;;  %v1410_v46 = vmax.f32 %v1113_v55, 0.0 }
 0x514   :  { %v1732_v60 = vpop.f32.mrf.mxu0 }
 0x515   :  { %v1474_v48 = vpack.c.bf16 %v1410_v46, %v1408_v13  ;;  %v1733_v21 = vadd.f32 %v3503_v40, %v1732_v60 }
 0x517   :  { %1771 = vmatmul.bf16.gmra.mxu0 %v1474_v48  ;;  %v1902_v30 = vadd.f32 %v1901_v37, %v1733_v21  ;;  %v1918_v3 = vpop.f32.mrf.mxu1 }
 0x51c   :  { %v1734_v52 = vpop.f32.mrf.mxu0 }
 0x51d   :  { %v1735_v33 = vadd.f32 %v3503_v40, %v1734_v52 }
 0x51f   :  { %v1904_v61 = vadd.f32 %v1903_v34, %v1735_v33  ;;  %v1921_v44 = vpop.f32.mrf.mxu1 }
 0x521   :  { %v2438_v54 = vpack.c.bf16 %v1904_v61, %v1902_v30 }
 0x523   :  { %2502 = vst [vmem:[%s3776_s9 + $0xb8] sm:$0xff] %v2438_v54  }
 0x524   :  { %v1737_v14 = vpop.f32.mrf.mxu0 }
 0x525   :  { %v1738_v51 = vadd.f32 %v3503_v40, %v1737_v14 }
 0x527   :  { %v1907_v17 = vadd.f32 %v1906_v29, %v1738_v51  ;;  %v1923_v37 = vpop.f32.mrf.mxu1 }
 0x52c   :  { %v1739_v53 = vpop.f32.mrf.mxu0 }
 0x52d   :  { %v1740_v20 = vadd.f32 %v3503_v40, %v1739_v53 }
 0x52f   :  { %v1909_v32 = vadd.f32 %v1908_v26, %v1740_v20  ;;  %v1926_v41 = vpop.f32.mrf.mxu1 }
 0x531   :  { %v2443_v63 = vpack.c.bf16 %v1909_v32, %v1907_v17 }
 0x533   :  { %2503 = vst [vmem:[%s3776_s9 + $0xc0] sm:$0xff] %v2443_v63  }
 0x534   :  { %v1742_v45 = vpop.f32.mrf.mxu0 }
 0x535   :  { %v1743_v16 = vadd.f32 %v3503_v40, %v1742_v45 }
 0x537   :  { %v1912_v0 = vadd.f32 %v1911_v12, %v1743_v16  ;;  %v1928_v9 = vpop.f32.mrf.mxu1 }
 0x53c   :  { %v1744_v36 = vpop.f32.mrf.mxu0 }
 0x53d   :  { %v1745_v47 = vadd.f32 %v3503_v40, %v1744_v36 }
 0x53f   :  { %v1914_v50 = vadd.f32 %v1913_v25, %v1745_v47  ;;  %v1931_v35 = vpop.f32.mrf.mxu1 }
 0x541   :  { %v2448_v39 = vpack.c.bf16 %v1914_v50, %v1912_v0 }
 0x543   :  { %2504 = vst [vmem:[%s3776_s9 + $0xc8] sm:$0xff] %v2448_v39  }
 0x544   :  { %v1747_v7 = vpop.f32.mrf.mxu0 }
 0x545   :  { %v1748_v38 = vadd.f32 %v3503_v40, %v1747_v7 }
 0x547   :  { %v1917_v24 = vadd.f32 %v1916_v18, %v1748_v38  ;;  %v1933_v10 = vpop.f32.mrf.mxu1 }
 0x54c   :  { %v1749_v58 = vpop.f32.mrf.mxu0 }
 0x54d   :  { %v1750_v1 = vadd.f32 %v3503_v40, %v1749_v58 }
 0x54f   :  { %v1919_v15 = vadd.f32 %v1918_v3, %v1750_v1  ;;  %v1936_v55 = vpop.f32.mrf.mxu1 }
 0x551   :  { %v2453_v42 = vpack.c.bf16 %v1919_v15, %v1917_v24 }
 0x553   :  { %2505 = vst [vmem:[%s3776_s9 + $0xd0] sm:$0xff] %v2453_v42  }
 0x554   :  { %v1752_v56 = vpop.f32.mrf.mxu0 }
 0x555   :  { %v1753_v31 = vadd.f32 %v3503_v40, %v1752_v56 }
 0x557   :  { %v1922_v8 = vadd.f32 %v1921_v44, %v1753_v31  ;;  %v1938_v46 = vpop.f32.mrf.mxu1 }
 0x55c   :  { %v1754_v34 = vpop.f32.mrf.mxu0 }
 0x55d   :  { %v1755_v43 = vadd.f32 %v3503_v40, %v1754_v34 }
 0x55f   :  { %v1924_v5 = vadd.f32 %v1923_v37, %v1755_v43  ;;  %v1941_v30 = vpop.f32.mrf.mxu1 }
 0x561   :  { %v2458_v57 = vpack.c.bf16 %v1924_v5, %v1922_v8 }
 0x563   :  { %2506 = vst [vmem:[%s3776_s9 + $0xd8] sm:$0xff] %v2458_v57  }
 0x564   :  { %v1757_v22 = vpop.f32.mrf.mxu0 }
 0x565   :  { %v1758_v4 = vadd.f32 %v3503_v40, %v1757_v22 }
 0x567   :  { %v1927_v29 = vadd.f32 %v1926_v41, %v1758_v4  ;;  %v1943_v51 = vpop.f32.mrf.mxu1 }
 0x56c   :  { %v1759_v59 = vpop.f32.mrf.mxu0 }
 0x56d   :  { %v1760_v11 = vadd.f32 %v3503_v40, %v1759_v59 }
 0x56f   :  { %v1929_v23 = vadd.f32 %v1928_v9, %v1760_v11 }
 0x571   :  { %v2463_v49 = vpack.c.bf16 %v1929_v23, %v1927_v29 }
 0x573   :  { %2507 = vst [vmem:[%s3776_s9 + $0xe0] sm:$0xff] %v2463_v49  }
 0x574   :  { %v1762_v19 = vpop.f32.mrf.mxu0 }
 0x575   :  { %v1763_v2 = vadd.f32 %v3503_v40, %v1762_v19 }
 0x577   :  { %v1932_v27 = vadd.f32 %v1931_v35, %v1763_v2 }
 0x57c   :  { %v1764_v28 = vpop.f32.mrf.mxu0 }
 0x57d   :  { %v1765_v6 = vadd.f32 %v3503_v40, %v1764_v28 }
 0x57f   :  { %v1934_v62 = vadd.f32 %v1933_v10, %v1765_v6 }
 0x581   :  { %v2468_v26 = vpack.c.bf16 %v1934_v62, %v1932_v27 }
 0x583   :  { %2508 = vst [vmem:[%s3776_s9 + $0xe8] sm:$0xff] %v2468_v26  }
 0x584   :  { %v1767_v13 = vpop.f32.mrf.mxu0 }
 0x585   :  { %v1768_v60 = vadd.f32 %v3503_v40, %v1767_v13 }
 0x587   :  { %v1937_v12 = vadd.f32 %v1936_v55, %v1768_v60 }
 0x58c   :  { %v1769_v48 = vpop.f32.mrf.mxu0 }
 0x58d   :  { %v1770_v21 = vadd.f32 %v3503_v40, %v1769_v48 }
 0x58f   :  { %v1939_v52 = vadd.f32 %v1938_v46, %v1770_v21 }
 0x591   :  { %v2473_v33 = vpack.c.bf16 %v1939_v52, %v1937_v12 }
 0x593   :  { %2509 = vst [vmem:[%s3776_s9 + $0xf0] sm:$0xff] %v2473_v33  }
 0x594   :  { %v1772_v61 = vpop.f32.mrf.mxu0 }
 0x595   :  { %v1773_v54 = vadd.f32 %v3503_v40, %v1772_v61 }
 0x597   :  { %v1942_v53 = vadd.f32 %v1941_v30, %v1773_v54 }
 0x59c   :  { %v1774_v14 = vpop.f32.mrf.mxu0 }
 0x59d   :  { %v1775_v25 = vadd.f32 %v3503_v40, %v1774_v14 }
 0x59f   :  { %v1944_v20 = vadd.f32 %v1943_v51, %v1775_v25 }
 0x5a1   :  { %v2478_v17 = vpack.c.bf16 %v1944_v20, %v1942_v53 }
 0x5a3   :  { %2510 = vst [vmem:[%s3776_s9 + $0xf8] sm:$0xff] %v2478_v17  }

</bundles_post_ra>
